<compile_context>
chip_gen: v7x
topology: tpu7x:2x2x1
jax: 0.10.0
libtpu: 0.0.40
codegen_flags: <defaults>
</compile_context>

<pallas_src>
import jax
import jax.numpy as jnp
from jax import lax
from jax.experimental import pallas as pl
from jax.experimental.pallas import tpu as pltpu


def _round_up(x, m):
    return (x + m - 1) // m * m


def _nbytes(shape, dtype):
    n = 1
    for d in shape:
        n *= int(d)
    return n * jnp.dtype(dtype).itemsize


def _choose_chunk_len(L, N, E, H, mm_bytes, budget_bytes=8 * 2 ** 20):
    """Largest divisor of L whose per-chunk buffers (double-buffered x chunk +
    gate-preactivation scratch) fit `budget_bytes` of VMEM.  Bounds residency
    for v7x (64 MiB/TC) while keeping the per-chunk input projection as large
    (MXU-friendly, ideally Lb*N >= 256 rows) as the budget allows."""
    best = 1
    for d in range(1, L + 1):
        if L % d:
            continue
        rows = d * N
        need = 2 * rows * E * mm_bytes + rows * 4 * H * mm_bytes
        if need <= budget_bytes:
            best = d
    return best


def character_model_forward(batch_ids, params, *, matmul_dtype=jnp.bfloat16,
                            chunk_len=None, out_dtype=jnp.float32):
    """batch_ids: int32 (B, S, L).  Returns (B, S, character_level_embedding)."""
    B, S, L = batch_ids.shape
    N = B * S
    E = params["emb"].shape[1]
    H = params["whh"].shape[1]
    C = params["wl"].shape[0]
    C_pad = _round_up(max(C, 128), 128)                 # lane-dense output slab
    mm_bytes = jnp.dtype(matmul_dtype).itemsize

    if chunk_len is None:
        chunk_len = _choose_chunk_len(L, N, E, H, mm_bytes)
    assert L % chunk_len == 0, (L, chunk_len)
    Lb = chunk_len
    nc = L // Lb
    # Cap unroll so long chunks don't bloat the instruction stream / vregs.
    unroll = True if Lb <= 8 else 4

    # Embedding gather directly in time-major order: transpose the tiny int32
    # index array, not the (L*N, E) activation tensor (no extra HBM pass).
    ids_t = jnp.transpose(batch_ids.reshape(N, L))      # (L, N)
    x = params["emb"][ids_t].reshape(L * N, E).astype(matmul_dtype)

    # Gate-column reorder: torch order (i, f, g, o) -> (i, f, o, g), so the
    # recurrence applies sigmoid to the first 3H columns and tanh to the last H.
    perm = jnp.concatenate([jnp.arange(0, H), jnp.arange(H, 2 * H),
                            jnp.arange(3 * H, 4 * H), jnp.arange(2 * H, 3 * H)])
    wih_t = params["wih"].T[:, perm].astype(matmul_dtype)    # (E, 4H)
    whh_t = params["whh"].T[:, perm].astype(matmul_dtype)    # (H, 4H)
    bg = (params["b_ih"] + params["b_hh"])[perm].reshape(1, 4 * H).astype(jnp.float32)
    wa = params["wa"].reshape(1, H).astype(jnp.float32)      # Linear(H, 1).weight
    ba = params["ba"].reshape(1, 1).astype(jnp.float32)

    wl_t = params["wl"].T.astype(jnp.float32)                # (2H, C)
    wl1 = jnp.zeros((H, C_pad), jnp.float32).at[:, :C].set(wl_t[:H]).astype(matmul_dtype)
    wl2 = jnp.zeros((H, C_pad), jnp.float32).at[:, :C].set(wl_t[H:]).astype(matmul_dtype)
    bl = jnp.zeros((1, C_pad), jnp.float32).at[:, :C].set(params["bl"].reshape(1, C))

    def kernel(x_ref, wih_ref, whh_ref, bg_ref, wa_ref, ba_ref,
               wl1_ref, wl2_ref, bl_ref, out_ref,
               xw_sc, h_sc, c_sc, ht_sc):
        ci = pl.program_id(0)

        @pl.when(ci == 0)
        def _():
            z = jnp.zeros((N, H), jnp.float32)
            h_sc[...] = z
            c_sc[...] = z
            ht_sc[...] = z

        # Per-chunk bulk input projection: ONE MXU matmul covering Lb steps.
        xw = (jnp.dot(x_ref[...], wih_ref[...], preferred_element_type=jnp.float32)
              + bg_ref[...])                                  # (Lb*N, 4H) f32
        # Store per-timestep slabs (leading-dim indexed -> cheap dynamic reads),
        # in the matmul dtype to halve the largest scratch + its store traffic.
        xw_sc[...] = xw.reshape(Lb, N, 4 * H).astype(matmul_dtype)

        # Hoisted loop invariants (JAX does not CSE broadcast_in_dim).
        wa_b = jnp.broadcast_to(wa_ref[...], (N, H))
        ba_b = jnp.broadcast_to(ba_ref[...], (N, 1))

        def step(t, carry):
            h, c, h_tilde = carry                             # (N, H) f32 each
            gates = (xw_sc[t].astype(jnp.float32)
                     + jnp.dot(h.astype(matmul_dtype), whh_ref[...],
                               preferred_element_type=jnp.float32))  # (N,4H) (i,f,o,g)
            sg = jax.nn.sigmoid(gates[:, :3 * H])             # i, f, o  (3*N*H EUP)
            g_g = jnp.tanh(gates[:, 3 * H:])                  # g        (1*N*H EUP)
            i_g = sg[:, :H]
            f_g = sg[:, H:2 * H]
            o_g = sg[:, 2 * H:]
            c = f_g * c + i_g * g_g
            h = o_g * jnp.tanh(c)
            # Attention fused into the recurrence: Softmax(dim=0) == softmax
            # over the N word axis, independently per timestep.
            s = jnp.sum(h * wa_b, axis=-1, keepdims=True) + ba_b        # (N, 1)
            s = s - jnp.max(s, axis=0, keepdims=True)
            e = jnp.exp(s)
            # approx reciprocal: attention weights sum to 1 only to ~2^-12.
            a = e * pl.reciprocal(jnp.sum(e, axis=0, keepdims=True), approx=True)
            h_tilde = h_tilde + a * h
            return h, c, h_tilde

        h, c, h_tilde = lax.fori_loop(0, Lb, step,
                                      (h_sc[...], c_sc[...], ht_sc[...]),
                                      unroll=unroll)
        h_sc[...] = h
        c_sc[...] = c
        ht_sc[...] = h_tilde

        @pl.when(ci == nc - 1)
        def _():
            out = (jnp.dot(h_tilde.astype(matmul_dtype), wl1_ref[...],
                           preferred_element_type=jnp.float32)
                   + jnp.dot(c.astype(matmul_dtype), wl2_ref[...],
                             preferred_element_type=jnp.float32)
                   + bl_ref[...])                             # (N, C_pad) lane-dense
            out_ref[...] = out.astype(out_ref.dtype)

    const2 = lambda c: (0, 0)
    in_specs = [
        pl.BlockSpec((Lb * N, E), lambda c: (c, 0)),   # x chunk — pipelined across grid
        pl.BlockSpec((E, 4 * H), const2),              # W_ih^T (gate-reordered)
        pl.BlockSpec((H, 4 * H), const2),              # W_hh^T (gate-reordered)
        pl.BlockSpec((1, 4 * H), const2),              # b_ih + b_hh (gate-reordered)
        pl.BlockSpec((1, H), const2),                  # attention weight
        pl.BlockSpec((1, 1), const2),                  # attention bias
        pl.BlockSpec((H, C_pad), const2),              # W_lin^T (h_tilde half), lane-padded
        pl.BlockSpec((H, C_pad), const2),              # W_lin^T (cell half), lane-padded
        pl.BlockSpec((1, C_pad), const2),              # b_lin, lane-padded
    ]
    out_spec = pl.BlockSpec((N, C_pad), const2)
    scratch_shapes = [
        pltpu.VMEM((Lb, N, 4 * H), matmul_dtype),      # chunk gate preactivations
        pltpu.VMEM((N, H), jnp.float32),               # h        (persists across chunks)
        pltpu.VMEM((N, H), jnp.float32),               # c
        pltpu.VMEM((N, H), jnp.float32),               # h_tilde accumulator
    ]

    # VMEM limit from actual buffer sizes + headroom; never the full v7x budget.
    block_bytes = (
        _nbytes((Lb * N, E), matmul_dtype) + _nbytes((E, 4 * H), matmul_dtype)
        + _nbytes((H, 4 * H), matmul_dtype) + _nbytes((1, 4 * H), jnp.float32)
        + _nbytes((1, H), jnp.float32) + _nbytes((1, 1), jnp.float32)
        + 2 * _nbytes((H, C_pad), matmul_dtype) + _nbytes((1, C_pad), jnp.float32)
        + _nbytes((N, C_pad), out_dtype))
    scratch_bytes = (_nbytes((Lb, N, 4 * H), matmul_dtype)
                     + 3 * _nbytes((N, H), jnp.float32))
    est = 2 * block_bytes + scratch_bytes              # in/out blocks double-buffered
    vmem_limit = int(min(48 * 2 ** 20, max(16 * 2 ** 20, 2 * est + 8 * 2 ** 20)))

    v_hat = pl.pallas_call(
        kernel,
        out_shape=jax.ShapeDtypeStruct((N, C_pad), out_dtype),
        grid_spec=pltpu.PrefetchScalarGridSpec(
            num_scalar_prefetch=0,
            grid=(nc,),
            in_specs=in_specs,
            out_specs=out_spec,
            scratch_shapes=scratch_shapes,
        ),
        compiler_params=pltpu.CompilerParams(
            dimension_semantics=("arbitrary",),        # sequential recurrence over L chunks
            vmem_limit_bytes=vmem_limit,
        ),
    )(x, wih_t, whh_t, bg, wa, ba, wl1, wl2, bl)

    return v_hat[:, :C].reshape(B, S, C)


def character_model_reference(batch_ids, params):
    """Pure-JAX reference mirroring the PyTorch forward exactly."""
    emb = params["emb"][batch_ids]                     # (B, S, L, E)
    B, S, L, E = emb.shape
    N = B * S
    H = params["whh"].shape[1]
    x = emb.reshape(N, L, E)
    h = jnp.zeros((N, H), jnp.float32)
    c = jnp.zeros((N, H), jnp.float32)
    b = params["b_ih"] + params["b_hh"]
    hs = []
    for t in range(L):
        gates = x[:, t] @ params["wih"].T + h @ params["whh"].T + b
        i = jax.nn.sigmoid(gates[:, :H])
        f = jax.nn.sigmoid(gates[:, H:2 * H])
        g = jnp.tanh(gates[:, 2 * H:3 * H])
        o = jax.nn.sigmoid(gates[:, 3 * H:])
        c = f * c + i * g
        h = o * jnp.tanh(c)
        hs.append(h)
    hid = jnp.stack(hs, axis=1)                        # (N, L, H)
    att = hid @ params["wa"].T + params["ba"]          # (N, L, 1)
    a = jax.nn.softmax(att, axis=0)                    # Softmax(dim=0) over batch dim
    h_tilde = jnp.einsum("nlh,nl->nh", hid, a[..., 0]) # (N, H)
    cat = jnp.concatenate([h_tilde, c], axis=1)        # (N, 2H)
    v = cat @ params["wl"].T + params["bl"]
    return v.reshape(B, S, -1)


if __name__ == "__main__":
    # Small shapes consistent with the module's forward.
    B, S, L = 2, 4, 8           # batch of (B, S) words, each L characters
    V = 20                      # vocab_size
    E = 16                      # embedding_size
    H = 32                      # hidden_size
    C = E                       # character_level_embedding (must equal E for the final .view)

    key = jax.random.PRNGKey(0)
    ks = jax.random.split(key, 10)
    sc = 0.1
    params = {
        "emb":  jax.random.normal(ks[0], (V, E), jnp.float32) * sc,
        "wih":  jax.random.normal(ks[1], (4 * H, E), jnp.float32) * sc,
        "whh":  jax.random.normal(ks[2], (4 * H, H), jnp.float32) * sc,
        "b_ih": jax.random.normal(ks[3], (4 * H,), jnp.float32) * sc,
        "b_hh": jax.random.normal(ks[4], (4 * H,), jnp.float32) * sc,
        "wa":   jax.random.normal(ks[5], (1, H), jnp.float32) * sc,
        "ba":   jax.random.normal(ks[6], (1,), jnp.float32) * sc,
        "wl":   jax.random.normal(ks[7], (C, 2 * H), jnp.float32) * sc,
        "bl":   jax.random.normal(ks[8], (C,), jnp.float32) * sc,
    }
    batch_ids = jax.random.randint(ks[9], (B, S, L), 0, V, dtype=jnp.int32)

    ref = character_model_reference(batch_ids, params)

    # f32 MXU operands, auto-chosen (single) chunk: tight check vs. reference.
    out_f32 = jax.block_until_ready(
        character_model_forward(batch_ids, params, matmul_dtype=jnp.float32))
    assert out_f32.shape == (B, S, C), out_f32.shape
    assert jnp.allclose(out_f32, ref, rtol=2e-3, atol=2e-3), \
        f"f32 max abs err {jnp.max(jnp.abs(out_f32 - ref))}"

    # f32, forced multi-chunk grid: exercises the L-chunked recurrence and the
    # h/c/h_tilde state carry across grid steps.
    out_chunked = jax.block_until_ready(
        character_model_forward(batch_ids, params, matmul_dtype=jnp.float32,
                                chunk_len=2))
    assert out_chunked.shape == (B, S, C), out_chunked.shape
    assert jnp.allclose(out_chunked, ref, rtol=2e-3, atol=2e-3), \
        f"chunked f32 max abs err {jnp.max(jnp.abs(out_chunked - ref))}"

    # bf16 MXU operands + bf16 gate-preactivation scratch (production default
    # on v6e/v7x): looser tolerance.
    out_bf16 = jax.block_until_ready(character_model_forward(batch_ids, params))
    assert out_bf16.shape == (B, S, C), out_bf16.shape
    assert jnp.allclose(out_bf16, ref, rtol=3e-2, atol=3e-2), \
        f"bf16 max abs err {jnp.max(jnp.abs(out_bf16 - ref))}"

    print("KERNEL_OK")
</pallas_src>

<mosaic_0001>
module attributes {stable_mosaic.version = 11 : i64} {
  func.func @kernel(%arg0: i32, %arg1: memref<64x16xf32, #tpu.memory_space<vmem>>, %arg2: memref<16x128xf32, #tpu.memory_space<vmem>>, %arg3: memref<32x128xf32, #tpu.memory_space<vmem>>, %arg4: memref<1x128xf32, #tpu.memory_space<vmem>>, %arg5: memref<1x32xf32, #tpu.memory_space<vmem>>, %arg6: memref<1x1xf32, #tpu.memory_space<vmem>>, %arg7: memref<32x128xf32, #tpu.memory_space<vmem>>, %arg8: memref<32x128xf32, #tpu.memory_space<vmem>>, %arg9: memref<1x128xf32, #tpu.memory_space<vmem>>, %arg10: memref<8x128xf32, #tpu.memory_space<vmem>>, %arg11: memref<8x8x128xf32, #tpu.memory_space<vmem>>, %arg12: memref<8x32xf32, #tpu.memory_space<vmem>>, %arg13: memref<8x32xf32, #tpu.memory_space<vmem>>, %arg14: memref<8x32xf32, #tpu.memory_space<vmem>>) attributes {dimension_semantics = [#tpu.dimension_semantics<arbitrary>], iteration_bounds = array<i64: 1>, scalar_prefetch = 0 : i64, scratch_operands = 4 : i64, tpu.core_type = #tpu.core_type<tc>, window_params = [{transform_indices = @transform_0, window_bounds = array<i64: 64, 16>}, {pipeline_mode = #tpu.pipeline_mode<synchronous>, transform_indices = @transform_1, window_bounds = array<i64: 16, 128>}, {pipeline_mode = #tpu.pipeline_mode<synchronous>, transform_indices = @transform_2, window_bounds = array<i64: 32, 128>}, {pipeline_mode = #tpu.pipeline_mode<synchronous>, transform_indices = @transform_3, window_bounds = array<i64: 1, 128>}, {pipeline_mode = #tpu.pipeline_mode<synchronous>, transform_indices = @transform_4, window_bounds = array<i64: 1, 32>}, {pipeline_mode = #tpu.pipeline_mode<synchronous>, transform_indices = @transform_5, window_bounds = array<i64: 1, 1>}, {pipeline_mode = #tpu.pipeline_mode<synchronous>, transform_indices = @transform_6, window_bounds = array<i64: 32, 128>}, {pipeline_mode = #tpu.pipeline_mode<synchronous>, transform_indices = @transform_7, window_bounds = array<i64: 32, 128>}, {pipeline_mode = #tpu.pipeline_mode<synchronous>, transform_indices = @transform_8, window_bounds = array<i64: 1, 128>}, {pipeline_mode = #tpu.pipeline_mode<synchronous>, transform_indices = @transform_9, window_bounds = array<i64: 8, 128>}]} {
    %c0_i32 = arith.constant 0 : i32
    %0 = arith.cmpi eq, %arg0, %c0_i32 : i32
    %1 = arith.extui %0 : i1 to i32
    %c0_i32_0 = arith.constant 0 : i32
    %2 = arith.cmpi ne, %1, %c0_i32_0 : i32
    scf.if %2 {
      %cst_100 = arith.constant 0.000000e+00 : f32
      %338 = vector.broadcast %cst_100 : f32 to vector<8x32xf32>
      %c0_101 = arith.constant 0 : index
      %c0_102 = arith.constant 0 : index
      %339 = vector.load %arg12[%c0_101, %c0_102] : memref<8x32xf32, #tpu.memory_space<vmem>>, vector<8x32xf32>
      tpu.vector_store %arg12[%c0_101, %c0_102], %338 {strides = array<i32>} : memref<8x32xf32, #tpu.memory_space<vmem>>, vector<8x32xf32>,
      %c0_103 = arith.constant 0 : index
      %c0_104 = arith.constant 0 : index
      %340 = vector.load %arg13[%c0_103, %c0_104] : memref<8x32xf32, #tpu.memory_space<vmem>>, vector<8x32xf32>
      tpu.vector_store %arg13[%c0_103, %c0_104], %338 {strides = array<i32>} : memref<8x32xf32, #tpu.memory_space<vmem>>, vector<8x32xf32>,
      %c0_105 = arith.constant 0 : index
      %c0_106 = arith.constant 0 : index
      %341 = vector.load %arg14[%c0_105, %c0_106] : memref<8x32xf32, #tpu.memory_space<vmem>>, vector<8x32xf32>
      tpu.vector_store %arg14[%c0_105, %c0_106], %338 {strides = array<i32>} : memref<8x32xf32, #tpu.memory_space<vmem>>, vector<8x32xf32>,
    } else {
    }
    %c0 = arith.constant 0 : index
    %c0_1 = arith.constant 0 : index
    %3 = vector.load %arg1[%c0, %c0_1] : memref<64x16xf32, #tpu.memory_space<vmem>>, vector<64x16xf32>
    %c0_2 = arith.constant 0 : index
    %c0_3 = arith.constant 0 : index
    %4 = vector.load %arg2[%c0_2, %c0_3] : memref<16x128xf32, #tpu.memory_space<vmem>>, vector<16x128xf32>
    %cst = arith.constant dense<0.000000e+00> : vector<64x128xf32>
    %5 = tpu.matmul %3, %4, %cst {dimension_numbers = #tpu.dot_dimension_numbers<[1], [0], [0], [1], [0, 0, 1, 1], [], []>} : vector<64x16xf32>, vector<16x128xf32>, vector<64x128xf32> -> vector<64x128xf32>
    %c0_4 = arith.constant 0 : index
    %c0_5 = arith.constant 0 : index
    %6 = vector.load %arg4[%c0_4, %c0_5] : memref<1x128xf32, #tpu.memory_space<vmem>>, vector<1x128xf32>
    %7 = vector.broadcast %6 : vector<1x128xf32> to vector<64x128xf32>
    %8 = arith.addf %5, %7 : vector<64x128xf32>
    %9 = vector.shape_cast %8 : vector<64x128xf32> to vector<8x8x128xf32>
    %c0_6 = arith.constant 0 : index
    %c0_7 = arith.constant 0 : index
    %c0_8 = arith.constant 0 : index
    %10 = vector.load %arg11[%c0_6, %c0_7, %c0_8] : memref<8x8x128xf32, #tpu.memory_space<vmem>>, vector<8x8x128xf32>
    tpu.vector_store %arg11[%c0_6, %c0_7, %c0_8], %9 {strides = array<i32>} : memref<8x8x128xf32, #tpu.memory_space<vmem>>, vector<8x8x128xf32>,
    %c0_9 = arith.constant 0 : index
    %c0_10 = arith.constant 0 : index
    %11 = vector.load %arg5[%c0_9, %c0_10] : memref<1x32xf32, #tpu.memory_space<vmem>>, vector<1x32xf32>
    %12 = vector.shape_cast %11 : vector<1x32xf32> to vector<1x32xf32>
    %13 = vector.broadcast %12 : vector<1x32xf32> to vector<8x32xf32>
    %c0_11 = arith.constant 0 : index
    %c0_12 = arith.constant 0 : index
    %14 = vector.load %arg6[%c0_11, %c0_12] : memref<1x1xf32, #tpu.memory_space<vmem>>, vector<1x1xf32>
    %15 = vector.shape_cast %14 : vector<1x1xf32> to vector<1x1xf32>
    %16 = vector.broadcast %15 : vector<1x1xf32> to vector<8x1xf32>
    %c0_13 = arith.constant 0 : index
    %c0_14 = arith.constant 0 : index
    %17 = vector.load %arg12[%c0_13, %c0_14] : memref<8x32xf32, #tpu.memory_space<vmem>>, vector<8x32xf32>
    %c0_15 = arith.constant 0 : index
    %c0_16 = arith.constant 0 : index
    %18 = vector.load %arg13[%c0_15, %c0_16] : memref<8x32xf32, #tpu.memory_space<vmem>>, vector<8x32xf32>
    %c0_17 = arith.constant 0 : index
    %c0_18 = arith.constant 0 : index
    %19 = vector.load %arg14[%c0_17, %c0_18] : memref<8x32xf32, #tpu.memory_space<vmem>>, vector<8x32xf32>
    %c0_i32_19 = arith.constant 0 : i32
    %20 = arith.index_cast %c0_i32_19 : i32 to index
    %c0_20 = arith.constant 0 : index
    %c0_21 = arith.constant 0 : index
    %21 = vector.load %arg11[%20, %c0_20, %c0_21] : memref<8x8x128xf32, #tpu.memory_space<vmem>>, vector<1x8x128xf32>
    %22 = vector.shape_cast %21 : vector<1x8x128xf32> to vector<8x128xf32>
    %c0_22 = arith.constant 0 : index
    %c0_23 = arith.constant 0 : index
    %23 = vector.load %arg3[%c0_22, %c0_23] : memref<32x128xf32, #tpu.memory_space<vmem>>, vector<32x128xf32>
    %cst_24 = arith.constant dense<0.000000e+00> : vector<8x128xf32>
    %24 = tpu.matmul %17, %23, %cst_24 {dimension_numbers = #tpu.dot_dimension_numbers<[1], [0], [0], [1], [0, 0, 1, 1], [], []>} : vector<8x32xf32>, vector<32x128xf32>, vector<8x128xf32> -> vector<8x128xf32>
    %25 = arith.addf %22, %24 : vector<8x128xf32>
    %26 = vector.extract_strided_slice %25 {offsets = [0, 0], sizes = [8, 96], strides = [1, 1]} : vector<8x128xf32> to vector<8x96xf32>
    %27 = arith.negf %26 : vector<8x96xf32>
    %28 = math.exp %27 : vector<8x96xf32>
    %cst_25 = arith.constant 1.000000e+00 : f32
    %29 = vector.broadcast %cst_25 : f32 to vector<8x96xf32>
    %30 = arith.addf %29, %28 : vector<8x96xf32>
    %31 = arith.divf %29, %30 : vector<8x96xf32>
    %32 = vector.extract_strided_slice %25 {offsets = [0, 96], sizes = [8, 32], strides = [1, 1]} : vector<8x128xf32> to vector<8x32xf32>
    %33 = math.tanh %32 : vector<8x32xf32>
    %34 = vector.extract_strided_slice %31 {offsets = [0, 0], sizes = [8, 32], strides = [1, 1]} : vector<8x96xf32> to vector<8x32xf32>
    %35 = vector.extract_strided_slice %31 {offsets = [0, 32], sizes = [8, 32], strides = [1, 1]} : vector<8x96xf32> to vector<8x32xf32>
    %36 = vector.extract_strided_slice %31 {offsets = [0, 64], sizes = [8, 32], strides = [1, 1]} : vector<8x96xf32> to vector<8x32xf32>
    %37 = arith.mulf %35, %18 : vector<8x32xf32>
    %38 = arith.mulf %34, %33 : vector<8x32xf32>
    %39 = arith.addf %37, %38 : vector<8x32xf32>
    %40 = math.tanh %39 : vector<8x32xf32>
    %41 = arith.mulf %36, %40 : vector<8x32xf32>
    %42 = arith.mulf %41, %13 : vector<8x32xf32>
    %cst_26 = arith.constant dense<0.000000e+00> : vector<8xf32>
    %43 = vector.multi_reduction <add>, %42, %cst_26 [1] : vector<8x32xf32> to vector<8xf32>
    %44 = vector.shape_cast %43 : vector<8xf32> to vector<8x1xf32>
    %45 = arith.addf %44, %16 : vector<8x1xf32>
    %cst_27 = arith.constant dense<0xFF800000> : vector<1xf32>
    %46 = vector.multi_reduction <maximumf>, %45, %cst_27 [0] : vector<8x1xf32> to vector<1xf32>
    %47 = vector.shape_cast %46 : vector<1xf32> to vector<1x1xf32>
    %48 = vector.broadcast %47 : vector<1x1xf32> to vector<8x1xf32>
    %49 = arith.subf %45, %48 : vector<8x1xf32>
    %50 = math.exp %49 : vector<8x1xf32>
    %cst_28 = arith.constant dense<0.000000e+00> : vector<1xf32>
    %51 = vector.multi_reduction <add>, %50, %cst_28 [0] : vector<8x1xf32> to vector<1xf32>
    %52 = vector.shape_cast %51 : vector<1xf32> to vector<1x1xf32>
    %53 = tpu.reciprocal %52 {approx = true} : vector<1x1xf32> -> vector<1x1xf32>
    %54 = vector.broadcast %53 : vector<1x1xf32> to vector<8x1xf32>
    %55 = arith.mulf %50, %54 : vector<8x1xf32>
    %56 = vector.broadcast %55 : vector<8x1xf32> to vector<8x32xf32>
    %57 = arith.mulf %56, %41 : vector<8x32xf32>
    %58 = arith.addf %19, %57 : vector<8x32xf32>
    %c1_i32 = arith.constant 1 : i32
    %59 = arith.index_cast %c1_i32 : i32 to index
    %c0_29 = arith.constant 0 : index
    %c0_30 = arith.constant 0 : index
    %60 = vector.load %arg11[%59, %c0_29, %c0_30] : memref<8x8x128xf32, #tpu.memory_space<vmem>>, vector<1x8x128xf32>
    %61 = vector.shape_cast %60 : vector<1x8x128xf32> to vector<8x128xf32>
    %c0_31 = arith.constant 0 : index
    %c0_32 = arith.constant 0 : index
    %62 = vector.load %arg3[%c0_31, %c0_32] : memref<32x128xf32, #tpu.memory_space<vmem>>, vector<32x128xf32>
    %cst_33 = arith.constant dense<0.000000e+00> : vector<8x128xf32>
    %63 = tpu.matmul %41, %62, %cst_33 {dimension_numbers = #tpu.dot_dimension_numbers<[1], [0], [0], [1], [0, 0, 1, 1], [], []>} : vector<8x32xf32>, vector<32x128xf32>, vector<8x128xf32> -> vector<8x128xf32>
    %64 = arith.addf %61, %63 : vector<8x128xf32>
    %65 = vector.extract_strided_slice %64 {offsets = [0, 0], sizes = [8, 96], strides = [1, 1]} : vector<8x128xf32> to vector<8x96xf32>
    %66 = arith.negf %65 : vector<8x96xf32>
    %67 = math.exp %66 : vector<8x96xf32>
    %cst_34 = arith.constant 1.000000e+00 : f32
    %68 = vector.broadcast %cst_34 : f32 to vector<8x96xf32>
    %69 = arith.addf %68, %67 : vector<8x96xf32>
    %70 = arith.divf %68, %69 : vector<8x96xf32>
    %71 = vector.extract_strided_slice %64 {offsets = [0, 96], sizes = [8, 32], strides = [1, 1]} : vector<8x128xf32> to vector<8x32xf32>
    %72 = math.tanh %71 : vector<8x32xf32>
    %73 = vector.extract_strided_slice %70 {offsets = [0, 0], sizes = [8, 32], strides = [1, 1]} : vector<8x96xf32> to vector<8x32xf32>
    %74 = vector.extract_strided_slice %70 {offsets = [0, 32], sizes = [8, 32], strides = [1, 1]} : vector<8x96xf32> to vector<8x32xf32>
    %75 = vector.extract_strided_slice %70 {offsets = [0, 64], sizes = [8, 32], strides = [1, 1]} : vector<8x96xf32> to vector<8x32xf32>
    %76 = arith.mulf %74, %39 : vector<8x32xf32>
    %77 = arith.mulf %73, %72 : vector<8x32xf32>
    %78 = arith.addf %76, %77 : vector<8x32xf32>
    %79 = math.tanh %78 : vector<8x32xf32>
    %80 = arith.mulf %75, %79 : vector<8x32xf32>
    %81 = arith.mulf %80, %13 : vector<8x32xf32>
    %cst_35 = arith.constant dense<0.000000e+00> : vector<8xf32>
    %82 = vector.multi_reduction <add>, %81, %cst_35 [1] : vector<8x32xf32> to vector<8xf32>
    %83 = vector.shape_cast %82 : vector<8xf32> to vector<8x1xf32>
    %84 = arith.addf %83, %16 : vector<8x1xf32>
    %cst_36 = arith.constant dense<0xFF800000> : vector<1xf32>
    %85 = vector.multi_reduction <maximumf>, %84, %cst_36 [0] : vector<8x1xf32> to vector<1xf32>
    %86 = vector.shape_cast %85 : vector<1xf32> to vector<1x1xf32>
    %87 = vector.broadcast %86 : vector<1x1xf32> to vector<8x1xf32>
    %88 = arith.subf %84, %87 : vector<8x1xf32>
    %89 = math.exp %88 : vector<8x1xf32>
    %cst_37 = arith.constant dense<0.000000e+00> : vector<1xf32>
    %90 = vector.multi_reduction <add>, %89, %cst_37 [0] : vector<8x1xf32> to vector<1xf32>
    %91 = vector.shape_cast %90 : vector<1xf32> to vector<1x1xf32>
    %92 = tpu.reciprocal %91 {approx = true} : vector<1x1xf32> -> vector<1x1xf32>
    %93 = vector.broadcast %92 : vector<1x1xf32> to vector<8x1xf32>
    %94 = arith.mulf %89, %93 : vector<8x1xf32>
    %95 = vector.broadcast %94 : vector<8x1xf32> to vector<8x32xf32>
    %96 = arith.mulf %95, %80 : vector<8x32xf32>
    %97 = arith.addf %58, %96 : vector<8x32xf32>
    %c2_i32 = arith.constant 2 : i32
    %98 = arith.index_cast %c2_i32 : i32 to index
    %c0_38 = arith.constant 0 : index
    %c0_39 = arith.constant 0 : index
    %99 = vector.load %arg11[%98, %c0_38, %c0_39] : memref<8x8x128xf32, #tpu.memory_space<vmem>>, vector<1x8x128xf32>
    %100 = vector.shape_cast %99 : vector<1x8x128xf32> to vector<8x128xf32>
    %c0_40 = arith.constant 0 : index
    %c0_41 = arith.constant 0 : index
    %101 = vector.load %arg3[%c0_40, %c0_41] : memref<32x128xf32, #tpu.memory_space<vmem>>, vector<32x128xf32>
    %cst_42 = arith.constant dense<0.000000e+00> : vector<8x128xf32>
    %102 = tpu.matmul %80, %101, %cst_42 {dimension_numbers = #tpu.dot_dimension_numbers<[1], [0], [0], [1], [0, 0, 1, 1], [], []>} : vector<8x32xf32>, vector<32x128xf32>, vector<8x128xf32> -> vector<8x128xf32>
    %103 = arith.addf %100, %102 : vector<8x128xf32>
    %104 = vector.extract_strided_slice %103 {offsets = [0, 0], sizes = [8, 96], strides = [1, 1]} : vector<8x128xf32> to vector<8x96xf32>
    %105 = arith.negf %104 : vector<8x96xf32>
    %106 = math.exp %105 : vector<8x96xf32>
    %cst_43 = arith.constant 1.000000e+00 : f32
    %107 = vector.broadcast %cst_43 : f32 to vector<8x96xf32>
    %108 = arith.addf %107, %106 : vector<8x96xf32>
    %109 = arith.divf %107, %108 : vector<8x96xf32>
    %110 = vector.extract_strided_slice %103 {offsets = [0, 96], sizes = [8, 32], strides = [1, 1]} : vector<8x128xf32> to vector<8x32xf32>
    %111 = math.tanh %110 : vector<8x32xf32>
    %112 = vector.extract_strided_slice %109 {offsets = [0, 0], sizes = [8, 32], strides = [1, 1]} : vector<8x96xf32> to vector<8x32xf32>
    %113 = vector.extract_strided_slice %109 {offsets = [0, 32], sizes = [8, 32], strides = [1, 1]} : vector<8x96xf32> to vector<8x32xf32>
    %114 = vector.extract_strided_slice %109 {offsets = [0, 64], sizes = [8, 32], strides = [1, 1]} : vector<8x96xf32> to vector<8x32xf32>
    %115 = arith.mulf %113, %78 : vector<8x32xf32>
    %116 = arith.mulf %112, %111 : vector<8x32xf32>
    %117 = arith.addf %115, %116 : vector<8x32xf32>
    %118 = math.tanh %117 : vector<8x32xf32>
    %119 = arith.mulf %114, %118 : vector<8x32xf32>
    %120 = arith.mulf %119, %13 : vector<8x32xf32>
    %cst_44 = arith.constant dense<0.000000e+00> : vector<8xf32>
    %121 = vector.multi_reduction <add>, %120, %cst_44 [1] : vector<8x32xf32> to vector<8xf32>
    %122 = vector.shape_cast %121 : vector<8xf32> to vector<8x1xf32>
    %123 = arith.addf %122, %16 : vector<8x1xf32>
    %cst_45 = arith.constant dense<0xFF800000> : vector<1xf32>
    %124 = vector.multi_reduction <maximumf>, %123, %cst_45 [0] : vector<8x1xf32> to vector<1xf32>
    %125 = vector.shape_cast %124 : vector<1xf32> to vector<1x1xf32>
    %126 = vector.broadcast %125 : vector<1x1xf32> to vector<8x1xf32>
    %127 = arith.subf %123, %126 : vector<8x1xf32>
    %128 = math.exp %127 : vector<8x1xf32>
    %cst_46 = arith.constant dense<0.000000e+00> : vector<1xf32>
    %129 = vector.multi_reduction <add>, %128, %cst_46 [0] : vector<8x1xf32> to vector<1xf32>
    %130 = vector.shape_cast %129 : vector<1xf32> to vector<1x1xf32>
    %131 = tpu.reciprocal %130 {approx = true} : vector<1x1xf32> -> vector<1x1xf32>
    %132 = vector.broadcast %131 : vector<1x1xf32> to vector<8x1xf32>
    %133 = arith.mulf %128, %132 : vector<8x1xf32>
    %134 = vector.broadcast %133 : vector<8x1xf32> to vector<8x32xf32>
    %135 = arith.mulf %134, %119 : vector<8x32xf32>
    %136 = arith.addf %97, %135 : vector<8x32xf32>
    %c3_i32 = arith.constant 3 : i32
    %137 = arith.index_cast %c3_i32 : i32 to index
    %c0_47 = arith.constant 0 : index
    %c0_48 = arith.constant 0 : index
    %138 = vector.load %arg11[%137, %c0_47, %c0_48] : memref<8x8x128xf32, #tpu.memory_space<vmem>>, vector<1x8x128xf32>
    %139 = vector.shape_cast %138 : vector<1x8x128xf32> to vector<8x128xf32>
    %c0_49 = arith.constant 0 : index
    %c0_50 = arith.constant 0 : index
    %140 = vector.load %arg3[%c0_49, %c0_50] : memref<32x128xf32, #tpu.memory_space<vmem>>, vector<32x128xf32>
    %cst_51 = arith.constant dense<0.000000e+00> : vector<8x128xf32>
    %141 = tpu.matmul %119, %140, %cst_51 {dimension_numbers = #tpu.dot_dimension_numbers<[1], [0], [0], [1], [0, 0, 1, 1], [], []>} : vector<8x32xf32>, vector<32x128xf32>, vector<8x128xf32> -> vector<8x128xf32>
    %142 = arith.addf %139, %141 : vector<8x128xf32>
    %143 = vector.extract_strided_slice %142 {offsets = [0, 0], sizes = [8, 96], strides = [1, 1]} : vector<8x128xf32> to vector<8x96xf32>
    %144 = arith.negf %143 : vector<8x96xf32>
    %145 = math.exp %144 : vector<8x96xf32>
    %cst_52 = arith.constant 1.000000e+00 : f32
    %146 = vector.broadcast %cst_52 : f32 to vector<8x96xf32>
    %147 = arith.addf %146, %145 : vector<8x96xf32>
    %148 = arith.divf %146, %147 : vector<8x96xf32>
    %149 = vector.extract_strided_slice %142 {offsets = [0, 96], sizes = [8, 32], strides = [1, 1]} : vector<8x128xf32> to vector<8x32xf32>
    %150 = math.tanh %149 : vector<8x32xf32>
    %151 = vector.extract_strided_slice %148 {offsets = [0, 0], sizes = [8, 32], strides = [1, 1]} : vector<8x96xf32> to vector<8x32xf32>
    %152 = vector.extract_strided_slice %148 {offsets = [0, 32], sizes = [8, 32], strides = [1, 1]} : vector<8x96xf32> to vector<8x32xf32>
    %153 = vector.extract_strided_slice %148 {offsets = [0, 64], sizes = [8, 32], strides = [1, 1]} : vector<8x96xf32> to vector<8x32xf32>
    %154 = arith.mulf %152, %117 : vector<8x32xf32>
    %155 = arith.mulf %151, %150 : vector<8x32xf32>
    %156 = arith.addf %154, %155 : vector<8x32xf32>
    %157 = math.tanh %156 : vector<8x32xf32>
    %158 = arith.mulf %153, %157 : vector<8x32xf32>
    %159 = arith.mulf %158, %13 : vector<8x32xf32>
    %cst_53 = arith.constant dense<0.000000e+00> : vector<8xf32>
    %160 = vector.multi_reduction <add>, %159, %cst_53 [1] : vector<8x32xf32> to vector<8xf32>
    %161 = vector.shape_cast %160 : vector<8xf32> to vector<8x1xf32>
    %162 = arith.addf %161, %16 : vector<8x1xf32>
    %cst_54 = arith.constant dense<0xFF800000> : vector<1xf32>
    %163 = vector.multi_reduction <maximumf>, %162, %cst_54 [0] : vector<8x1xf32> to vector<1xf32>
    %164 = vector.shape_cast %163 : vector<1xf32> to vector<1x1xf32>
    %165 = vector.broadcast %164 : vector<1x1xf32> to vector<8x1xf32>
    %166 = arith.subf %162, %165 : vector<8x1xf32>
    %167 = math.exp %166 : vector<8x1xf32>
    %cst_55 = arith.constant dense<0.000000e+00> : vector<1xf32>
    %168 = vector.multi_reduction <add>, %167, %cst_55 [0] : vector<8x1xf32> to vector<1xf32>
    %169 = vector.shape_cast %168 : vector<1xf32> to vector<1x1xf32>
    %170 = tpu.reciprocal %169 {approx = true} : vector<1x1xf32> -> vector<1x1xf32>
    %171 = vector.broadcast %170 : vector<1x1xf32> to vector<8x1xf32>
    %172 = arith.mulf %167, %171 : vector<8x1xf32>
    %173 = vector.broadcast %172 : vector<8x1xf32> to vector<8x32xf32>
    %174 = arith.mulf %173, %158 : vector<8x32xf32>
    %175 = arith.addf %136, %174 : vector<8x32xf32>
    %c4_i32 = arith.constant 4 : i32
    %176 = arith.index_cast %c4_i32 : i32 to index
    %c0_56 = arith.constant 0 : index
    %c0_57 = arith.constant 0 : index
    %177 = vector.load %arg11[%176, %c0_56, %c0_57] : memref<8x8x128xf32, #tpu.memory_space<vmem>>, vector<1x8x128xf32>
    %178 = vector.shape_cast %177 : vector<1x8x128xf32> to vector<8x128xf32>
    %c0_58 = arith.constant 0 : index
    %c0_59 = arith.constant 0 : index
    %179 = vector.load %arg3[%c0_58, %c0_59] : memref<32x128xf32, #tpu.memory_space<vmem>>, vector<32x128xf32>
    %cst_60 = arith.constant dense<0.000000e+00> : vector<8x128xf32>
    %180 = tpu.matmul %158, %179, %cst_60 {dimension_numbers = #tpu.dot_dimension_numbers<[1], [0], [0], [1], [0, 0, 1, 1], [], []>} : vector<8x32xf32>, vector<32x128xf32>, vector<8x128xf32> -> vector<8x128xf32>
    %181 = arith.addf %178, %180 : vector<8x128xf32>
    %182 = vector.extract_strided_slice %181 {offsets = [0, 0], sizes = [8, 96], strides = [1, 1]} : vector<8x128xf32> to vector<8x96xf32>
    %183 = arith.negf %182 : vector<8x96xf32>
    %184 = math.exp %183 : vector<8x96xf32>
    %cst_61 = arith.constant 1.000000e+00 : f32
    %185 = vector.broadcast %cst_61 : f32 to vector<8x96xf32>
    %186 = arith.addf %185, %184 : vector<8x96xf32>
    %187 = arith.divf %185, %186 : vector<8x96xf32>
    %188 = vector.extract_strided_slice %181 {offsets = [0, 96], sizes = [8, 32], strides = [1, 1]} : vector<8x128xf32> to vector<8x32xf32>
    %189 = math.tanh %188 : vector<8x32xf32>
    %190 = vector.extract_strided_slice %187 {offsets = [0, 0], sizes = [8, 32], strides = [1, 1]} : vector<8x96xf32> to vector<8x32xf32>
    %191 = vector.extract_strided_slice %187 {offsets = [0, 32], sizes = [8, 32], strides = [1, 1]} : vector<8x96xf32> to vector<8x32xf32>
    %192 = vector.extract_strided_slice %187 {offsets = [0, 64], sizes = [8, 32], strides = [1, 1]} : vector<8x96xf32> to vector<8x32xf32>
    %193 = arith.mulf %191, %156 : vector<8x32xf32>
    %194 = arith.mulf %190, %189 : vector<8x32xf32>
    %195 = arith.addf %193, %194 : vector<8x32xf32>
    %196 = math.tanh %195 : vector<8x32xf32>
    %197 = arith.mulf %192, %196 : vector<8x32xf32>
    %198 = arith.mulf %197, %13 : vector<8x32xf32>
    %cst_62 = arith.constant dense<0.000000e+00> : vector<8xf32>
    %199 = vector.multi_reduction <add>, %198, %cst_62 [1] : vector<8x32xf32> to vector<8xf32>
    %200 = vector.shape_cast %199 : vector<8xf32> to vector<8x1xf32>
    %201 = arith.addf %200, %16 : vector<8x1xf32>
    %cst_63 = arith.constant dense<0xFF800000> : vector<1xf32>
    %202 = vector.multi_reduction <maximumf>, %201, %cst_63 [0] : vector<8x1xf32> to vector<1xf32>
    %203 = vector.shape_cast %202 : vector<1xf32> to vector<1x1xf32>
    %204 = vector.broadcast %203 : vector<1x1xf32> to vector<8x1xf32>
    %205 = arith.subf %201, %204 : vector<8x1xf32>
    %206 = math.exp %205 : vector<8x1xf32>
    %cst_64 = arith.constant dense<0.000000e+00> : vector<1xf32>
    %207 = vector.multi_reduction <add>, %206, %cst_64 [0] : vector<8x1xf32> to vector<1xf32>
    %208 = vector.shape_cast %207 : vector<1xf32> to vector<1x1xf32>
    %209 = tpu.reciprocal %208 {approx = true} : vector<1x1xf32> -> vector<1x1xf32>
    %210 = vector.broadcast %209 : vector<1x1xf32> to vector<8x1xf32>
    %211 = arith.mulf %206, %210 : vector<8x1xf32>
    %212 = vector.broadcast %211 : vector<8x1xf32> to vector<8x32xf32>
    %213 = arith.mulf %212, %197 : vector<8x32xf32>
    %214 = arith.addf %175, %213 : vector<8x32xf32>
    %c5_i32 = arith.constant 5 : i32
    %215 = arith.index_cast %c5_i32 : i32 to index
    %c0_65 = arith.constant 0 : index
    %c0_66 = arith.constant 0 : index
    %216 = vector.load %arg11[%215, %c0_65, %c0_66] : memref<8x8x128xf32, #tpu.memory_space<vmem>>, vector<1x8x128xf32>
    %217 = vector.shape_cast %216 : vector<1x8x128xf32> to vector<8x128xf32>
    %c0_67 = arith.constant 0 : index
    %c0_68 = arith.constant 0 : index
    %218 = vector.load %arg3[%c0_67, %c0_68] : memref<32x128xf32, #tpu.memory_space<vmem>>, vector<32x128xf32>
    %cst_69 = arith.constant dense<0.000000e+00> : vector<8x128xf32>
    %219 = tpu.matmul %197, %218, %cst_69 {dimension_numbers = #tpu.dot_dimension_numbers<[1], [0], [0], [1], [0, 0, 1, 1], [], []>} : vector<8x32xf32>, vector<32x128xf32>, vector<8x128xf32> -> vector<8x128xf32>
    %220 = arith.addf %217, %219 : vector<8x128xf32>
    %221 = vector.extract_strided_slice %220 {offsets = [0, 0], sizes = [8, 96], strides = [1, 1]} : vector<8x128xf32> to vector<8x96xf32>
    %222 = arith.negf %221 : vector<8x96xf32>
    %223 = math.exp %222 : vector<8x96xf32>
    %cst_70 = arith.constant 1.000000e+00 : f32
    %224 = vector.broadcast %cst_70 : f32 to vector<8x96xf32>
    %225 = arith.addf %224, %223 : vector<8x96xf32>
    %226 = arith.divf %224, %225 : vector<8x96xf32>
    %227 = vector.extract_strided_slice %220 {offsets = [0, 96], sizes = [8, 32], strides = [1, 1]} : vector<8x128xf32> to vector<8x32xf32>
    %228 = math.tanh %227 : vector<8x32xf32>
    %229 = vector.extract_strided_slice %226 {offsets = [0, 0], sizes = [8, 32], strides = [1, 1]} : vector<8x96xf32> to vector<8x32xf32>
    %230 = vector.extract_strided_slice %226 {offsets = [0, 32], sizes = [8, 32], strides = [1, 1]} : vector<8x96xf32> to vector<8x32xf32>
    %231 = vector.extract_strided_slice %226 {offsets = [0, 64], sizes = [8, 32], strides = [1, 1]} : vector<8x96xf32> to vector<8x32xf32>
    %232 = arith.mulf %230, %195 : vector<8x32xf32>
    %233 = arith.mulf %229, %228 : vector<8x32xf32>
    %234 = arith.addf %232, %233 : vector<8x32xf32>
    %235 = math.tanh %234 : vector<8x32xf32>
    %236 = arith.mulf %231, %235 : vector<8x32xf32>
    %237 = arith.mulf %236, %13 : vector<8x32xf32>
    %cst_71 = arith.constant dense<0.000000e+00> : vector<8xf32>
    %238 = vector.multi_reduction <add>, %237, %cst_71 [1] : vector<8x32xf32> to vector<8xf32>
    %239 = vector.shape_cast %238 : vector<8xf32> to vector<8x1xf32>
    %240 = arith.addf %239, %16 : vector<8x1xf32>
    %cst_72 = arith.constant dense<0xFF800000> : vector<1xf32>
    %241 = vector.multi_reduction <maximumf>, %240, %cst_72 [0] : vector<8x1xf32> to vector<1xf32>
    %242 = vector.shape_cast %241 : vector<1xf32> to vector<1x1xf32>
    %243 = vector.broadcast %242 : vector<1x1xf32> to vector<8x1xf32>
    %244 = arith.subf %240, %243 : vector<8x1xf32>
    %245 = math.exp %244 : vector<8x1xf32>
    %cst_73 = arith.constant dense<0.000000e+00> : vector<1xf32>
    %246 = vector.multi_reduction <add>, %245, %cst_73 [0] : vector<8x1xf32> to vector<1xf32>
    %247 = vector.shape_cast %246 : vector<1xf32> to vector<1x1xf32>
    %248 = tpu.reciprocal %247 {approx = true} : vector<1x1xf32> -> vector<1x1xf32>
    %249 = vector.broadcast %248 : vector<1x1xf32> to vector<8x1xf32>
    %250 = arith.mulf %245, %249 : vector<8x1xf32>
    %251 = vector.broadcast %250 : vector<8x1xf32> to vector<8x32xf32>
    %252 = arith.mulf %251, %236 : vector<8x32xf32>
    %253 = arith.addf %214, %252 : vector<8x32xf32>
    %c6_i32 = arith.constant 6 : i32
    %254 = arith.index_cast %c6_i32 : i32 to index
    %c0_74 = arith.constant 0 : index
    %c0_75 = arith.constant 0 : index
    %255 = vector.load %arg11[%254, %c0_74, %c0_75] : memref<8x8x128xf32, #tpu.memory_space<vmem>>, vector<1x8x128xf32>
    %256 = vector.shape_cast %255 : vector<1x8x128xf32> to vector<8x128xf32>
    %c0_76 = arith.constant 0 : index
    %c0_77 = arith.constant 0 : index
    %257 = vector.load %arg3[%c0_76, %c0_77] : memref<32x128xf32, #tpu.memory_space<vmem>>, vector<32x128xf32>
    %cst_78 = arith.constant dense<0.000000e+00> : vector<8x128xf32>
    %258 = tpu.matmul %236, %257, %cst_78 {dimension_numbers = #tpu.dot_dimension_numbers<[1], [0], [0], [1], [0, 0, 1, 1], [], []>} : vector<8x32xf32>, vector<32x128xf32>, vector<8x128xf32> -> vector<8x128xf32>
    %259 = arith.addf %256, %258 : vector<8x128xf32>
    %260 = vector.extract_strided_slice %259 {offsets = [0, 0], sizes = [8, 96], strides = [1, 1]} : vector<8x128xf32> to vector<8x96xf32>
    %261 = arith.negf %260 : vector<8x96xf32>
    %262 = math.exp %261 : vector<8x96xf32>
    %cst_79 = arith.constant 1.000000e+00 : f32
    %263 = vector.broadcast %cst_79 : f32 to vector<8x96xf32>
    %264 = arith.addf %263, %262 : vector<8x96xf32>
    %265 = arith.divf %263, %264 : vector<8x96xf32>
    %266 = vector.extract_strided_slice %259 {offsets = [0, 96], sizes = [8, 32], strides = [1, 1]} : vector<8x128xf32> to vector<8x32xf32>
    %267 = math.tanh %266 : vector<8x32xf32>
    %268 = vector.extract_strided_slice %265 {offsets = [0, 0], sizes = [8, 32], strides = [1, 1]} : vector<8x96xf32> to vector<8x32xf32>
    %269 = vector.extract_strided_slice %265 {offsets = [0, 32], sizes = [8, 32], strides = [1, 1]} : vector<8x96xf32> to vector<8x32xf32>
    %270 = vector.extract_strided_slice %265 {offsets = [0, 64], sizes = [8, 32], strides = [1, 1]} : vector<8x96xf32> to vector<8x32xf32>
    %271 = arith.mulf %269, %234 : vector<8x32xf32>
    %272 = arith.mulf %268, %267 : vector<8x32xf32>
    %273 = arith.addf %271, %272 : vector<8x32xf32>
    %274 = math.tanh %273 : vector<8x32xf32>
    %275 = arith.mulf %270, %274 : vector<8x32xf32>
    %276 = arith.mulf %275, %13 : vector<8x32xf32>
    %cst_80 = arith.constant dense<0.000000e+00> : vector<8xf32>
    %277 = vector.multi_reduction <add>, %276, %cst_80 [1] : vector<8x32xf32> to vector<8xf32>
    %278 = vector.shape_cast %277 : vector<8xf32> to vector<8x1xf32>
    %279 = arith.addf %278, %16 : vector<8x1xf32>
    %cst_81 = arith.constant dense<0xFF800000> : vector<1xf32>
    %280 = vector.multi_reduction <maximumf>, %279, %cst_81 [0] : vector<8x1xf32> to vector<1xf32>
    %281 = vector.shape_cast %280 : vector<1xf32> to vector<1x1xf32>
    %282 = vector.broadcast %281 : vector<1x1xf32> to vector<8x1xf32>
    %283 = arith.subf %279, %282 : vector<8x1xf32>
    %284 = math.exp %283 : vector<8x1xf32>
    %cst_82 = arith.constant dense<0.000000e+00> : vector<1xf32>
    %285 = vector.multi_reduction <add>, %284, %cst_82 [0] : vector<8x1xf32> to vector<1xf32>
    %286 = vector.shape_cast %285 : vector<1xf32> to vector<1x1xf32>
    %287 = tpu.reciprocal %286 {approx = true} : vector<1x1xf32> -> vector<1x1xf32>
    %288 = vector.broadcast %287 : vector<1x1xf32> to vector<8x1xf32>
    %289 = arith.mulf %284, %288 : vector<8x1xf32>
    %290 = vector.broadcast %289 : vector<8x1xf32> to vector<8x32xf32>
    %291 = arith.mulf %290, %275 : vector<8x32xf32>
    %292 = arith.addf %253, %291 : vector<8x32xf32>
    %c7_i32 = arith.constant 7 : i32
    %293 = arith.index_cast %c7_i32 : i32 to index
    %c0_83 = arith.constant 0 : index
    %c0_84 = arith.constant 0 : index
    %294 = vector.load %arg11[%293, %c0_83, %c0_84] : memref<8x8x128xf32, #tpu.memory_space<vmem>>, vector<1x8x128xf32>
    %295 = vector.shape_cast %294 : vector<1x8x128xf32> to vector<8x128xf32>
    %c0_85 = arith.constant 0 : index
    %c0_86 = arith.constant 0 : index
    %296 = vector.load %arg3[%c0_85, %c0_86] : memref<32x128xf32, #tpu.memory_space<vmem>>, vector<32x128xf32>
    %cst_87 = arith.constant dense<0.000000e+00> : vector<8x128xf32>
    %297 = tpu.matmul %275, %296, %cst_87 {dimension_numbers = #tpu.dot_dimension_numbers<[1], [0], [0], [1], [0, 0, 1, 1], [], []>} : vector<8x32xf32>, vector<32x128xf32>, vector<8x128xf32> -> vector<8x128xf32>
    %298 = arith.addf %295, %297 : vector<8x128xf32>
    %299 = vector.extract_strided_slice %298 {offsets = [0, 0], sizes = [8, 96], strides = [1, 1]} : vector<8x128xf32> to vector<8x96xf32>
    %300 = arith.negf %299 : vector<8x96xf32>
    %301 = math.exp %300 : vector<8x96xf32>
    %cst_88 = arith.constant 1.000000e+00 : f32
    %302 = vector.broadcast %cst_88 : f32 to vector<8x96xf32>
    %303 = arith.addf %302, %301 : vector<8x96xf32>
    %304 = arith.divf %302, %303 : vector<8x96xf32>
    %305 = vector.extract_strided_slice %298 {offsets = [0, 96], sizes = [8, 32], strides = [1, 1]} : vector<8x128xf32> to vector<8x32xf32>
    %306 = math.tanh %305 : vector<8x32xf32>
    %307 = vector.extract_strided_slice %304 {offsets = [0, 0], sizes = [8, 32], strides = [1, 1]} : vector<8x96xf32> to vector<8x32xf32>
    %308 = vector.extract_strided_slice %304 {offsets = [0, 32], sizes = [8, 32], strides = [1, 1]} : vector<8x96xf32> to vector<8x32xf32>
    %309 = vector.extract_strided_slice %304 {offsets = [0, 64], sizes = [8, 32], strides = [1, 1]} : vector<8x96xf32> to vector<8x32xf32>
    %310 = arith.mulf %308, %273 : vector<8x32xf32>
    %311 = arith.mulf %307, %306 : vector<8x32xf32>
    %312 = arith.addf %310, %311 : vector<8x32xf32>
    %313 = math.tanh %312 : vector<8x32xf32>
    %314 = arith.mulf %309, %313 : vector<8x32xf32>
    %315 = arith.mulf %314, %13 : vector<8x32xf32>
    %cst_89 = arith.constant dense<0.000000e+00> : vector<8xf32>
    %316 = vector.multi_reduction <add>, %315, %cst_89 [1] : vector<8x32xf32> to vector<8xf32>
    %317 = vector.shape_cast %316 : vector<8xf32> to vector<8x1xf32>
    %318 = arith.addf %317, %16 : vector<8x1xf32>
    %cst_90 = arith.constant dense<0xFF800000> : vector<1xf32>
    %319 = vector.multi_reduction <maximumf>, %318, %cst_90 [0] : vector<8x1xf32> to vector<1xf32>
    %320 = vector.shape_cast %319 : vector<1xf32> to vector<1x1xf32>
    %321 = vector.broadcast %320 : vector<1x1xf32> to vector<8x1xf32>
    %322 = arith.subf %318, %321 : vector<8x1xf32>
    %323 = math.exp %322 : vector<8x1xf32>
    %cst_91 = arith.constant dense<0.000000e+00> : vector<1xf32>
    %324 = vector.multi_reduction <add>, %323, %cst_91 [0] : vector<8x1xf32> to vector<1xf32>
    %325 = vector.shape_cast %324 : vector<1xf32> to vector<1x1xf32>
    %326 = tpu.reciprocal %325 {approx = true} : vector<1x1xf32> -> vector<1x1xf32>
    %327 = vector.broadcast %326 : vector<1x1xf32> to vector<8x1xf32>
    %328 = arith.mulf %323, %327 : vector<8x1xf32>
    %329 = vector.broadcast %328 : vector<8x1xf32> to vector<8x32xf32>
    %330 = arith.mulf %329, %314 : vector<8x32xf32>
    %331 = arith.addf %292, %330 : vector<8x32xf32>
    %c8_i32 = arith.constant 8 : i32
    %c0_92 = arith.constant 0 : index
    %c0_93 = arith.constant 0 : index
    %332 = vector.load %arg12[%c0_92, %c0_93] : memref<8x32xf32, #tpu.memory_space<vmem>>, vector<8x32xf32>
    tpu.vector_store %arg12[%c0_92, %c0_93], %314 {strides = array<i32>} : memref<8x32xf32, #tpu.memory_space<vmem>>, vector<8x32xf32>,
    %c0_94 = arith.constant 0 : index
    %c0_95 = arith.constant 0 : index
    %333 = vector.load %arg13[%c0_94, %c0_95] : memref<8x32xf32, #tpu.memory_space<vmem>>, vector<8x32xf32>
    tpu.vector_store %arg13[%c0_94, %c0_95], %312 {strides = array<i32>} : memref<8x32xf32, #tpu.memory_space<vmem>>, vector<8x32xf32>,
    %c0_96 = arith.constant 0 : index
    %c0_97 = arith.constant 0 : index
    %334 = vector.load %arg14[%c0_96, %c0_97] : memref<8x32xf32, #tpu.memory_space<vmem>>, vector<8x32xf32>
    tpu.vector_store %arg14[%c0_96, %c0_97], %331 {strides = array<i32>} : memref<8x32xf32, #tpu.memory_space<vmem>>, vector<8x32xf32>,
    %c0_i32_98 = arith.constant 0 : i32
    %335 = arith.cmpi eq, %arg0, %c0_i32_98 : i32
    %336 = arith.extui %335 : i1 to i32
    %c0_i32_99 = arith.constant 0 : i32
    %337 = arith.cmpi ne, %336, %c0_i32_99 : i32
    scf.if %337 {
      %c0_100 = arith.constant 0 : index
      %c0_101 = arith.constant 0 : index
      %338 = vector.load %arg7[%c0_100, %c0_101] : memref<32x128xf32, #tpu.memory_space<vmem>>, vector<32x128xf32>
      %cst_102 = arith.constant dense<0.000000e+00> : vector<8x128xf32>
      %339 = tpu.matmul %331, %338, %cst_102 {dimension_numbers = #tpu.dot_dimension_numbers<[1], [0], [0], [1], [0, 0, 1, 1], [], []>} : vector<8x32xf32>, vector<32x128xf32>, vector<8x128xf32> -> vector<8x128xf32>
      %c0_103 = arith.constant 0 : index
      %c0_104 = arith.constant 0 : index
      %340 = vector.load %arg8[%c0_103, %c0_104] : memref<32x128xf32, #tpu.memory_space<vmem>>, vector<32x128xf32>
      %cst_105 = arith.constant dense<0.000000e+00> : vector<8x128xf32>
      %341 = tpu.matmul %312, %340, %cst_105 {dimension_numbers = #tpu.dot_dimension_numbers<[1], [0], [0], [1], [0, 0, 1, 1], [], []>} : vector<8x32xf32>, vector<32x128xf32>, vector<8x128xf32> -> vector<8x128xf32>
      %342 = arith.addf %339, %341 : vector<8x128xf32>
      %c0_106 = arith.constant 0 : index
      %c0_107 = arith.constant 0 : index
      %343 = vector.load %arg9[%c0_106, %c0_107] : memref<1x128xf32, #tpu.memory_space<vmem>>, vector<1x128xf32>
      %344 = vector.broadcast %343 : vector<1x128xf32> to vector<8x128xf32>
      %345 = arith.addf %342, %344 : vector<8x128xf32>
      %c0_108 = arith.constant 0 : index
      %c0_109 = arith.constant 0 : index
      %346 = vector.load %arg10[%c0_108, %c0_109] : memref<8x128xf32, #tpu.memory_space<vmem>>, vector<8x128xf32>
      tpu.vector_store %arg10[%c0_108, %c0_109], %345 {strides = array<i32>} : memref<8x128xf32, #tpu.memory_space<vmem>>, vector<8x128xf32>,
    } else {
    }
    return
  }
  func.func @transform_0(%arg0: i32) -> (i32, i32) {
    %c0_i32 = arith.constant 0 : i32
    %c0_i32_0 = arith.constant 0 : i32
    return %arg0, %c0_i32 : i32, i32
  }
  func.func @transform_1(%arg0: i32) -> (i32, i32) {
    %c0_i32 = arith.constant 0 : i32
    %c0_i32_0 = arith.constant 0 : i32
    %c0_i32_1 = arith.constant 0 : i32
    return %c0_i32, %c0_i32_0 : i32, i32
  }
  func.func @transform_2(%arg0: i32) -> (i32, i32) {
    %c0_i32 = arith.constant 0 : i32
    %c0_i32_0 = arith.constant 0 : i32
    %c0_i32_1 = arith.constant 0 : i32
    return %c0_i32, %c0_i32_0 : i32, i32
  }
  func.func @transform_3(%arg0: i32) -> (i32, i32) {
    %c0_i32 = arith.constant 0 : i32
    %c0_i32_0 = arith.constant 0 : i32
    %c0_i32_1 = arith.constant 0 : i32
    return %c0_i32, %c0_i32_0 : i32, i32
  }
  func.func @transform_4(%arg0: i32) -> (i32, i32) {
    %c0_i32 = arith.constant 0 : i32
    %c0_i32_0 = arith.constant 0 : i32
    %c0_i32_1 = arith.constant 0 : i32
    return %c0_i32, %c0_i32_0 : i32, i32
  }
  func.func @transform_5(%arg0: i32) -> (i32, i32) {
    %c0_i32 = arith.constant 0 : i32
    %c0_i32_0 = arith.constant 0 : i32
    %c0_i32_1 = arith.constant 0 : i32
    return %c0_i32, %c0_i32_0 : i32, i32
  }
  func.func @transform_6(%arg0: i32) -> (i32, i32) {
    %c0_i32 = arith.constant 0 : i32
    %c0_i32_0 = arith.constant 0 : i32
    %c0_i32_1 = arith.constant 0 : i32
    return %c0_i32, %c0_i32_0 : i32, i32
  }
  func.func @transform_7(%arg0: i32) -> (i32, i32) {
    %c0_i32 = arith.constant 0 : i32
    %c0_i32_0 = arith.constant 0 : i32
    %c0_i32_1 = arith.constant 0 : i32
    return %c0_i32, %c0_i32_0 : i32, i32
  }
  func.func @transform_8(%arg0: i32) -> (i32, i32) {
    %c0_i32 = arith.constant 0 : i32
    %c0_i32_0 = arith.constant 0 : i32
    %c0_i32_1 = arith.constant 0 : i32
    return %c0_i32, %c0_i32_0 : i32, i32
  }
  func.func @transform_9(%arg0: i32) -> (i32, i32) {
    %c0_i32 = arith.constant 0 : i32
    %c0_i32_0 = arith.constant 0 : i32
    %c0_i32_1 = arith.constant 0 : i32
    return %c0_i32, %c0_i32_0 : i32, i32
  }
}

</mosaic_0001>

<bundles_post_ra>
// kernel: tpu_custom_call.1
= control target key start
LH: loop header
LB: loop body
LE: loop exit
PB: predicated region body
PF: predicated region fallthrough
CT: control target
= control target key end

     0   :  { %s2396_s0 = inlined_call_operand.vmem [shape: f32[64,16], index: 0, kind: input, shape index: {}]   ;;  %s2397_s1 = inlined_call_operand.hbm [shape: f32[16,128], index: 1, kind: input, shape index: {}]   ;;  %s2398_s2 = inlined_call_operand.vmem [shape: f32[32,128], index: 2, kind: input, shape index: {}]   ;;  %s2399_s3 = inlined_call_operand.vmem [shape: f32[1,128], index: 3, kind: input, shape index: {}]   ;;  %s2400_s4 = inlined_call_operand.vmem [shape: f32[1,32], index: 4, kind: input, shape index: {}]   ;;  %s2401_s5 = inlined_call_operand.<no memory space> [shape: f32[1,1], index: 5, kind: input, shape index: {}]   ;;  %s2402_s6 = inlined_call_operand.vmem [shape: f32[32,128], index: 6, kind: input, shape index: {}]   ;;  %s2403_s7 = inlined_call_operand.vmem [shape: f32[32,128], index: 7, kind: input, shape index: {}]   ;;  %s2404_s8 = inlined_call_operand.vmem [shape: f32[1,128], index: 8, kind: input, shape index: {}]   ;;  %s2405_s9 = inlined_call_operand.hbm [shape: f32[8,128], index: 9, kind: output, shape index: {}]  }
   0x1   :  { %v14_v0 = vstv %s2401_s5 }
   0x2   :  { %15 = vst [vmem:[#allocation6] sm:$0x1] %v14_v0 }
   0x3   :  { %16 = vsyncpa [#allocation8], 0 }
   0x4   :  { %17 = vsyncpa [#allocation9], 0  ;;  %s1994_s11 = smov [#allocation7]   ;;  %s1946_s15 = scalar_lea.hbm %s2397_s1, 256 }
   0x5   :  { %s25_s12 = sshll.u32 %s1994_s11, 4  ;;  %p1947_p0 = scmp.ne.s32.totalorder %s2397_s1, %s1946_s15  ;;  %s26_s12 = int_to_ptr.vmem [resolvable:$true] %s25_s12 }
   0x6   :  { %p1950_p1 = scmp.lt.u32.totalorder %s1946_s15, %s2397_s1 }
   0x8   :  { %p1952_p2 = pnand %p1950_p1, %p1947_p0 }
   0xa   :  { %1955 = shalt.err (!%p1952_p2)
}
   0xb   :  { %s1956_s5 = scalar_lea.vmem %s26_s12, 256  ;;  %p1961_p4 = scmp.lt.s32.totalorder %s26_s12, %s26_s12 }
   0xc   :  { %p1957_p3 = scmp.ne.s32.totalorder %s26_s12, %s1956_s5  ;;  %p1962_p5 = scmp.lt.s32.totalorder %s1956_s5, %s1956_s5 }
   0xe   :  { %p1963_p6 = por %p1962_p5, %p1961_p4 }
  0x10   :  { %p1964_p7 = pnand %p1963_p6, %p1957_p3 }
  0x12   :  { %1967 = shalt.err (!%p1964_p7)
}
  0x13   :  { %s1995_s20 = smov 128   ;;  %s1996_s21 = smov 8  }
  0x14   :  { %31 = dma.hbm_to_vmem [thread:$0]  %s2397_s1, 256, %s26_s12, [#allocation8], %s1995_s20, %s1995_s20, %s1996_s21  }
  0x15   :  { %1990 = dma.done.wait [#allocation8], 256  }
  0x16   :  { %1991 = vsyncadd [#allocation8], 4294967040  ;;  %v1997_v1 = vmov 0.0|0.0   ;;  %vm1998_vm0 = vmmov 0   ;;  %v1999_v2 = vmov 0.0   ;;  %vm53_vm1 = vcmask 261120  }
  0x17   :  { %1777 = vmatprep.subr.bf16.mxu1 %v1997_v1  ;;  %1671 = vmatprep.mubr.msk.f32.mxu1 %vm1998_vm0, %v1999_v2  ;;  %54 = vst.msk [vmem:[#allocation3] sm:$0xff] %vm53_vm1, %v1999_v2  ;;  %55 = vst.msk [vmem:[#allocation4] sm:$0xff] %vm53_vm1, %v1999_v2  ;;  %vm74_vm2 = vcmask 130048   ;;  %v65_v3 = vld [vmem:[#allocation7] sm:$0xff]  ;;  %v66_v4 = vld [vmem:[#allocation7 + $0x8] sm:$0xff]  ;;  %s2000_s15 = smov 32  }
  0x18   :  { %56 = vst.msk [vmem:[#allocation5] sm:$0xff] %vm53_vm1, %v1999_v2  ;;  %v229_v5 = vld [vmem:[%s2398_s2] sm:$0xff]  ;;  %v1773_v6 = vpack.c.bf16 %v66_v4, %v65_v3  ;;  %v230_v7 = vld [vmem:[%s2398_s2 + $0x8] sm:$0xff]  ;;  %v231_v10 = vld [vmem:[%s2398_s2 + $0x10] sm:$0xff]  ;;  %vm348_vm3 = vcmask 7168   ;;  %s2003_s19 = smov 96  }
  0x19   :  { %v57_v8 = vld [vmem:[%s2396_s0] sm:$0xff]  ;;  %v2088_v9 = vpack.c.bf16 %v230_v7, %v229_v5  ;;  %v232_v11 = vld [vmem:[%s2398_s2 + $0x18] sm:$0xff]  ;;  %v58_v12 = vld [vmem:[%s2396_s0 + $0x8] sm:$0xff]  ;;  %s2004_s5 = smov [#allocation10]  }
  0x1a   :  { %1651 = vmatprep.mubr.msk.f32.mxu0 %vm74_vm2, %v57_v8  ;;  %1774 = vmatprep.subr.bf16.mxu0 %v1773_v6  ;;  %v2101_v13 = vpack.c.bf16 %v232_v11, %v231_v10  ;;  %v2122_v15 = vld [vmem:[%s2399_s3] ss:$0 sm:$0xff]  ;;  %s2001_s3 = smov 64   ;;  %v59_v52 = vld [vmem:[%s2396_s0 + $0x10] sm:$0xff]  ;;  %v60_v53 = vld [vmem:[%s2396_s0 + $0x18] sm:$0xff]  ;;  %s1548_s20 = sshll.u32 %s2004_s5, 4  ;;  %s1549_s20 = int_to_ptr.vmem [resolvable:$true] %s1548_s20 }
  0x1b   :  { %1779 = vmatpush3.bf16.msra.mxu1 %v2088_v9  ;;  %1776 = vmatpush3.bf16.msra.mxu0 %v1773_v6  ;;  %v61_v54 = vld [vmem:[%s2396_s0 + $0x20] sm:$0xff]  ;;  %v62_v55 = vld [vmem:[%s2396_s0 + $0x28] sm:$0xff]  ;;  %v63_v56 = vld [vmem:[%s2396_s0 + $0x30] sm:$0xff]  ;;  %s1968_s21 = scalar_lea.vmem %s1549_s20, 128  ;;  %p1973_p9 = scmp.lt.s32.totalorder %s1549_s20, %s1549_s20 }
  0x1c   :  { %1780 = vmatprep.subr.bf16.mxu1 %v1997_v1  ;;  %1789 = vmatprep.subr.bf16.mxu0 %v1997_v1  ;;  %v64_v57 = vld [vmem:[%s2396_s0 + $0x38] sm:$0xff]  ;;  %p1969_p8 = scmp.ne.s32.totalorder %s1549_s20, %s1968_s21  ;;  %p1974_p10 = scmp.lt.s32.totalorder %s1968_s21, %s1968_s21 }
  0x1e   :  { %1652 = vmatmul.mubr.msk.f32.vlgmr.msra.gmra.mrb[0].mxu0 %vm74_vm2, %v58_v12  ;;  %v225_v14 = vld [vmem:[#allocation3] sm:$0xff]  ;;  %v226_v23 = vld [vmem:[#allocation4] sm:$0xff]  ;;  %p1975_p11 = por %p1974_p10, %p1973_p9 }
  0x1f   :  { %1782 = vmatpush3.bf16.msra.mxu1 %v2101_v13  ;;  %1791 = vmatpush3.bf16.msra.mxu0 %v2088_v9 }
  0x20   :  { %1783 = vmatprep.subr.bf16.mxu1 %v1997_v1  ;;  %1792 = vmatprep.subr.bf16.mxu0 %v1997_v1  ;;  %p1976_p12 = pnand %p1975_p11, %p1969_p8 }
  0x21   :  { %1654 = vmatprep.mubr.msk.f32.mxu0 %vm74_vm2, %v59_v52 }
  0x22   :  { %1672 = vmatmul.mubr.msk.f32.vlgmr.msra.gmra.mrb[0].mxu1 %vm53_vm1, %v225_v14  ;;  %1655 = vmatmul.mubr.msk.f32.gmra.mrb[2].mxu0 %vm74_vm2, %v60_v53 }
  0x23   :  { %1785 = vmatpush3.bf16.msra.mxu1 %v2088_v9  ;;  %1682 = vmatprep.mubr.msk.f32.mxu1 %vm1998_vm0, %v1999_v2 }
  0x24   :  { %1786 = vmatprep.subr.bf16.mxu1 %v1997_v1  ;;  %1794 = vmatpush3.bf16.msra.mxu0 %v2101_v13 }
  0x25   :  { %1801 = vmatprep.subr.bf16.mxu0 %v1997_v1  ;;  %1657 = vmatprep.mubr.msk.f32.mxu0 %vm74_vm2, %v61_v54 }
  0x26   :  { %1658 = vmatmul.mubr.msk.f32.gmra.mrb[4].mxu0 %vm74_vm2, %v62_v55 }
  0x27   :  { %1788 = vmatpush3.bf16.msra.mxu1 %v2101_v13  ;;  %1660 = vmatprep.mubr.msk.f32.mxu0 %vm74_vm2, %v63_v56 }
  0x28   :  { %1795 = vmatprep.subr.bf16.mxu1 %v1997_v1 }
  0x2a   :  { %1661 = vmatmul.mubr.msk.f32.gmra.mrb[6].mxu0 %vm74_vm2, %v64_v57 }
  0x2b   :  { %1693 = vmatprep.mubr.msk.f32.mxu0 %vm1998_vm0, %v1999_v2 }
  0xf1   :  { %v1653_v16 = vpop.f32.mrb[0].mxu0 }
  0xf2   :  { %v165_v17 = vpop.f32.mrb[1].mxu0  ;;  %v171_v38 = vadd.f32 %v1653_v16, %v2122_v15 }
  0xf3   :  { %v166_v18 = vadd.f32 %v2122_v15, %v165_v17 }
  0xf5   :  { %v303_v19 = vpop.f32.mrb[0].mxu1  ;;  %v1656_v61 = vpop.f32.mrb[2].mxu0 }
  0xf6   :  { %v307_v20 = vadd.f32 %v303_v19, %v166_v18  ;;  %v1673_v21 = vpop.f32.mrb[1].mxu1  ;;  %v175_v62 = vpop.f32.mrb[3].mxu0 }
  0xf7   :  { %v176_v6 = vadd.f32 %v2122_v15, %v175_v62 }
  0xf8   :  { %1850 = vtanh.f32 %v307_v20  ;;  %v1569_v24 = vmul.f32 -1.442695, %v307_v20 }
  0xf9   :  { %v2174_v63 = vpop.f32.mrb[4].mxu0 }
  0xfa   :  { %1852 = vpow2.f32 %v1569_v24  ;;  %v2176_v0 = vpop.f32.mrb[5].mxu0 }
  0xfd   :  { %v2178_v3 = vpop.f32.mrb[6].mxu0 }
  0xfe   :  { %v2180_v4 = vpop.f32.mrb[7].mxu0 }
 0x102   :  { %v1851_v22 = vpop.eup %1850 }
 0x103   :  { %321 = vrot.lane.b32.xlu0 %v1851_v22, %s2000_s15 }
 0x104   :  { %v1853_v25 = vpop.eup %1852 }
 0x105   :  { %v311_v26 = vadd.f32 1.0, %v1853_v25 }
 0x107   :  { %316 = vrot.lane.b32.xlu0 %v226_v23, %s2000_s15  ;;  %1854 = vrcp.f32 %v311_v26 }
 0x111   :  { %v1855_v27 = vpop.eup %1854 }
 0x175   :  { %v322_v28 = vpop.permute.xlu0 %321 }
 0x176   :  { %v324_v29 = vmul.f32 %v1855_v27, %v322_v28 }
 0x178   :  { %326 = vrot.lane.b32.xlu1 %v324_v29, %s2000_s15 }
 0x179   :  { %v317_v30 = vpop.permute.xlu0 %316 }
 0x17a   :  { %v319_v31 = vmul.f32 %v1855_v27, %v317_v30 }
 0x1ea   :  { %v327_v32 = vpop.permute.xlu1 %326 }
 0x1eb   :  { %v329_v33 = vadd.f32 %v327_v32, %v319_v31 }
 0x1ed   :  { %1856 = vtanh.f32 %v329_v33 }
 0x1f7   :  { %v1857_v34 = vpop.eup %1856 }
 0x1f8   :  { %332 = vrot.lane.b32.xlu1 %v1857_v34, %s2000_s15 }
 0x26a   :  { %v333_v35 = vpop.permute.xlu1 %332 }
 0x26b   :  { %v2129_v36 = vmul.f32 %v1855_v27, %v333_v35  ;;  %v181_v27 = vadd.f32 %v1656_v61, %v2122_v15 }
 0x26d   :  { %382 = vrot.lane.b32.xlu0 %v2129_v36, %s2001_s3 }
 0x2df   :  { %v383_v37 = vpop.permute.xlu0 %382 }
 0x2e0   :  { %1683 = vmatmul.mubr.msk.f32.vlgmr.msra.gmra.mrb[2].mxu1 %vm53_vm1, %v383_v37 }
 0x2e1   :  { %1797 = vmatpush3.bf16.msra.mxu1 %v2088_v9  ;;  %1704 = vmatprep.mubr.msk.f32.mxu1 %vm1998_vm0, %v1999_v2 }
 0x2e2   :  { %1798 = vmatprep.subr.bf16.mxu1 %v1997_v1 }
 0x2e5   :  { %1800 = vmatpush3.bf16.msra.mxu1 %v2101_v13 }
 0x2e6   :  { %1807 = vmatprep.subr.bf16.mxu1 %v1997_v1 }
 0x3b3   :  { %v452_v39 = vpop.f32.mrb[2].mxu1 }
 0x3b4   :  { %v456_v40 = vadd.f32 %v452_v39, %v171_v38  ;;  %v1684_v41 = vpop.f32.mrb[3].mxu1 }
 0x3b6   :  { %1858 = vtanh.f32 %v456_v40  ;;  %v1571_v43 = vmul.f32 -1.442695, %v456_v40 }
 0x3b8   :  { %1860 = vpow2.f32 %v1571_v43 }
 0x3c0   :  { %v1859_v42 = vpop.eup %1858 }
 0x3c1   :  { %466 = vrot.lane.b32.xlu1 %v1859_v42, %s2000_s15 }
 0x3c2   :  { %v1861_v44 = vpop.eup %1860 }
 0x3c3   :  { %v460_v45 = vadd.f32 1.0, %v1861_v44 }
 0x3c5   :  { %1862 = vrcp.f32 %v460_v45 }
 0x3cf   :  { %v1863_v46 = vpop.eup %1862 }
 0x3d0   :  { %v464_v49 = vmul.f32 %v1863_v46, %v329_v33 }
 0x433   :  { %v467_v47 = vpop.permute.xlu1 %466 }
 0x434   :  { %v469_v48 = vmul.f32 %v1863_v46, %v467_v47 }
 0x436   :  { %471 = vrot.lane.b32.xlu0 %v469_v48, %s2000_s15 }
 0x4a8   :  { %v472_v50 = vpop.permute.xlu0 %471 }
 0x4a9   :  { %v474_v51 = vadd.f32 %v472_v50, %v464_v49 }
 0x4ab   :  { %1864 = vtanh.f32 %v474_v51 }
 0x4b5   :  { %v1865_v58 = vpop.eup %1864 }
 0x4b6   :  { %477 = vrot.lane.b32.xlu1 %v1865_v58, %s2000_s15 }
 0x528   :  { %v478_v59 = vpop.permute.xlu1 %477 }
 0x529   :  { %v2170_v60 = vmul.f32 %v1863_v46, %v478_v59  ;;  %v186_v46 = vadd.f32 %v2122_v15, %v2176_v0 }
 0x52b   :  { %523 = vrot.lane.b32.xlu0 %v2170_v60, %s2001_s3 }
 0x59d   :  { %v524_v5 = vpop.permute.xlu0 %523 }
 0x59e   :  { %1694 = vmatmul.mubr.msk.f32.vlgmr.msra.gmra.mrb[8].mxu0 %vm53_vm1, %v524_v5 }
 0x59f   :  { %1803 = vmatpush3.bf16.msra.mxu0 %v2088_v9  ;;  %1715 = vmatprep.mubr.msk.f32.mxu0 %vm1998_vm0, %v1999_v2 }
 0x5a0   :  { %1804 = vmatprep.subr.bf16.mxu0 %v1997_v1 }
 0x5a3   :  { %1806 = vmatpush3.bf16.msra.mxu0 %v2101_v13 }
 0x5a4   :  { %1813 = vmatprep.subr.bf16.mxu0 %v1997_v1 }
 0x671   :  { %v593_v7 = vpop.f32.mrb[8].mxu0 }
 0x672   :  { %v597_v8 = vadd.f32 %v593_v7, %v176_v6  ;;  %v1695_v10 = vpop.f32.mrb[9].mxu0  ;;  %v191_v6 = vadd.f32 %v2174_v63, %v2122_v15 }
 0x674   :  { %1866 = vtanh.f32 %v597_v8  ;;  %v1573_v12 = vmul.f32 -1.442695, %v597_v8 }
 0x676   :  { %1868 = vpow2.f32 %v1573_v12 }
 0x67e   :  { %v1867_v11 = vpop.eup %1866 }
 0x67f   :  { %607 = vrot.lane.b32.xlu1 %v1867_v11, %s2000_s15 }
 0x680   :  { %v1869_v14 = vpop.eup %1868 }
 0x681   :  { %v601_v16 = vadd.f32 1.0, %v1869_v14 }
 0x683   :  { %1870 = vrcp.f32 %v601_v16 }
 0x68d   :  { %v1871_v17 = vpop.eup %1870 }
 0x68e   :  { %v605_v20 = vmul.f32 %v1871_v17, %v474_v51 }
 0x6f1   :  { %v608_v18 = vpop.permute.xlu1 %607 }
 0x6f2   :  { %v610_v19 = vmul.f32 %v1871_v17, %v608_v18 }
 0x6f4   :  { %612 = vrot.lane.b32.xlu0 %v610_v19, %s2000_s15 }
 0x766   :  { %v613_v21 = vpop.permute.xlu0 %612 }
 0x767   :  { %v615_v22 = vadd.f32 %v613_v21, %v605_v20 }
 0x769   :  { %1872 = vtanh.f32 %v615_v22 }
 0x773   :  { %v1873_v23 = vpop.eup %1872 }
 0x774   :  { %618 = vrot.lane.b32.xlu1 %v1873_v23, %s2000_s15 }
 0x7e6   :  { %v619_v24 = vpop.permute.xlu1 %618 }
 0x7e7   :  { %v2193_v25 = vmul.f32 %v1871_v17, %v619_v24  ;;  %v196_v24 = vadd.f32 %v2122_v15, %v2180_v4 }
 0x7e9   :  { %664 = vrot.lane.b32.xlu0 %v2193_v25, %s2001_s3 }
 0x85b   :  { %v665_v26 = vpop.permute.xlu0 %664 }
 0x85c   :  { %1705 = vmatmul.mubr.msk.f32.vlgmr.msra.gmra.mrb[4].mxu1 %vm53_vm1, %v665_v26 }
 0x85d   :  { %1809 = vmatpush3.bf16.msra.mxu1 %v2088_v9  ;;  %1726 = vmatprep.mubr.msk.f32.mxu1 %vm1998_vm0, %v1999_v2 }
 0x85e   :  { %1810 = vmatprep.subr.bf16.mxu1 %v1997_v1 }
 0x861   :  { %1812 = vmatpush3.bf16.msra.mxu1 %v2101_v13 }
 0x862   :  { %1819 = vmatprep.subr.bf16.mxu1 %v1997_v1 }
 0x92f   :  { %v734_v28 = vpop.f32.mrb[4].mxu1 }
 0x930   :  { %v738_v29 = vadd.f32 %v734_v28, %v181_v27  ;;  %v1706_v30 = vpop.f32.mrb[5].mxu1 }
 0x932   :  { %1874 = vtanh.f32 %v738_v29  ;;  %v1575_v32 = vmul.f32 -1.442695, %v738_v29 }
 0x934   :  { %1876 = vpow2.f32 %v1575_v32 }
 0x93c   :  { %v1875_v31 = vpop.eup %1874 }
 0x93d   :  { %748 = vrot.lane.b32.xlu1 %v1875_v31, %s2000_s15 }
 0x93e   :  { %v1877_v33 = vpop.eup %1876 }
 0x93f   :  { %v742_v34 = vadd.f32 1.0, %v1877_v33 }
 0x941   :  { %1878 = vrcp.f32 %v742_v34 }
 0x94b   :  { %v1879_v35 = vpop.eup %1878 }
 0x94c   :  { %v746_v39 = vmul.f32 %v1879_v35, %v615_v22 }
 0x9af   :  { %v749_v37 = vpop.permute.xlu1 %748 }
 0x9b0   :  { %v751_v38 = vmul.f32 %v1879_v35, %v749_v37 }
 0x9b2   :  { %753 = vrot.lane.b32.xlu0 %v751_v38, %s2000_s15 }
 0xa24   :  { %v754_v40 = vpop.permute.xlu0 %753 }
 0xa25   :  { %v756_v41 = vadd.f32 %v754_v40, %v746_v39 }
 0xa27   :  { %1880 = vtanh.f32 %v756_v41 }
 0xa31   :  { %v1881_v42 = vpop.eup %1880 }
 0xa32   :  { %759 = vrot.lane.b32.xlu1 %v1881_v42, %s2000_s15 }
 0xaa4   :  { %v760_v43 = vpop.permute.xlu1 %759 }
 0xaa5   :  { %v2208_v44 = vmul.f32 %v1879_v35, %v760_v43  ;;  %v201_v43 = vadd.f32 %v2178_v3, %v2122_v15 }
 0xaa7   :  { %805 = vrot.lane.b32.xlu0 %v2208_v44, %s2001_s3 }
 0xb19   :  { %v806_v45 = vpop.permute.xlu0 %805 }
 0xb1a   :  { %1716 = vmatmul.mubr.msk.f32.vlgmr.msra.gmra.mrb[10].mxu0 %vm53_vm1, %v806_v45 }
 0xb1b   :  { %1815 = vmatpush3.bf16.msra.mxu0 %v2088_v9  ;;  %1737 = vmatprep.mubr.msk.f32.mxu0 %vm1998_vm0, %v1999_v2 }
 0xb1c   :  { %1816 = vmatprep.subr.bf16.mxu0 %v1997_v1 }
 0xb1f   :  { %1818 = vmatpush3.bf16.msra.mxu0 %v2101_v13 }
 0xb20   :  { %1825 = vmatprep.subr.bf16.mxu0 %v1997_v1 }
 0xbed   :  { %v875_v47 = vpop.f32.mrb[10].mxu0 }
 0xbee   :  { %v879_v48 = vadd.f32 %v875_v47, %v186_v46  ;;  %v1717_v49 = vpop.f32.mrb[11].mxu0 }
 0xbef   :  { %v1566_v49 = vld [vmem:[%s2400_s4] ss:$0 sm:$0xff] }
 0xbf0   :  { %1882 = vtanh.f32 %v879_v48  ;;  %v1577_v51 = vmul.f32 -1.442695, %v879_v48 }
 0xbf2   :  { %1884 = vpow2.f32 %v1577_v51 }
 0xbfa   :  { %v1883_v50 = vpop.eup %1882 }
 0xbfb   :  { %889 = vrot.lane.b32.xlu1 %v1883_v50, %s2000_s15 }
 0xbfc   :  { %v1885_v52 = vpop.eup %1884 }
 0xbfd   :  { %v883_v53 = vadd.f32 1.0, %v1885_v52 }
 0xbff   :  { %1886 = vrcp.f32 %v883_v53 }
 0xc09   :  { %v1887_v54 = vpop.eup %1886 }
 0xc0a   :  { %v887_v57 = vmul.f32 %v1887_v54, %v756_v41 }
 0xc6d   :  { %v890_v55 = vpop.permute.xlu1 %889 }
 0xc6e   :  { %v892_v56 = vmul.f32 %v1887_v54, %v890_v55 }
 0xc70   :  { %894 = vrot.lane.b32.xlu0 %v892_v56, %s2000_s15 }
 0xce2   :  { %v895_v58 = vpop.permute.xlu0 %894 }
 0xce3   :  { %v897_v59 = vadd.f32 %v895_v58, %v887_v57 }
 0xce5   :  { %1888 = vtanh.f32 %v897_v59 }
 0xcef   :  { %v1889_v61 = vpop.eup %1888 }
 0xcf0   :  { %900 = vrot.lane.b32.xlu1 %v1889_v61, %s2000_s15 }
 0xd62   :  { %v901_v62 = vpop.permute.xlu1 %900 }
 0xd63   :  { %v2224_v0 = vmul.f32 %v1887_v54, %v901_v62 }
 0xd65   :  { %946 = vrot.lane.b32.xlu0 %v2224_v0, %s2001_s3 }
 0xdd7   :  { %v947_v5 = vpop.permute.xlu0 %946 }
 0xdd8   :  { %1727 = vmatmul.mubr.msk.f32.vlgmr.msra.gmra.mrb[6].mxu1 %vm53_vm1, %v947_v5 }
 0xdd9   :  { %1821 = vmatpush3.bf16.msra.mxu1 %v2088_v9  ;;  %1748 = vmatprep.mubr.msk.f32.mxu1 %vm1998_vm0, %v1999_v2 }
 0xdda   :  { %1822 = vmatprep.subr.bf16.mxu1 %v1997_v1 }
 0xddd   :  { %1824 = vmatpush3.bf16.msra.mxu1 %v2101_v13 }
 0xdde   :  { %1831 = vmatprep.subr.bf16.mxu1 %v1997_v1 }
 0xeab   :  { %v1016_v7 = vpop.f32.mrb[6].mxu1 }
 0xeac   :  { %v1020_v8 = vadd.f32 %v1016_v7, %v191_v6  ;;  %v1728_v10 = vpop.f32.mrb[7].mxu1 }
 0xeae   :  { %1890 = vtanh.f32 %v1020_v8  ;;  %v1579_v9 = vmul.f32 -1.442695, %v1020_v8 }
 0xeb0   :  { %1892 = vpow2.f32 %v1579_v9 }
 0xeb8   :  { %v1891_v11 = vpop.eup %1890 }
 0xeb9   :  { %1030 = vrot.lane.b32.xlu1 %v1891_v11, %s2000_s15  ;;  %v2002_v11 = vmov 0  }
 0xeba   :  { %v1893_v12 = vpop.eup %1892  ;;  %1848 = vset.pattern.permute.xlu0 %v2002_v11  ;;  %1849 = vset.pattern.permute.xlu1 %v2002_v11 }
 0xebb   :  { %v1024_v14 = vadd.f32 1.0, %v1893_v12 }
 0xebd   :  { %1894 = vrcp.f32 %v1024_v14 }
 0xec7   :  { %v1895_v16 = vpop.eup %1894 }
 0xec8   :  { %v1028_v18 = vmul.f32 %v1895_v16, %v897_v59 }
 0xf2b   :  { %v1031_v17 = vpop.permute.xlu1 %1030 }
 0xf2c   :  { %v1033_v13 = vmul.f32 %v1895_v16, %v1031_v17 }
 0xf2e   :  { %1035 = vrot.lane.b32.xlu0 %v1033_v13, %s2000_s15 }
 0xfa0   :  { %v1036_v19 = vpop.permute.xlu0 %1035 }
 0xfa1   :  { %v1038_v63 = vadd.f32 %v1036_v19, %v1028_v18 }
 0xfa3   :  { %1896 = vtanh.f32 %v1038_v63 }
 0xfad   :  { %v1897_v20 = vpop.eup %1896 }
 0xfae   :  { %1041 = vrot.lane.b32.xlu1 %v1897_v20, %s2000_s15 }
0x1020   :  { %v1042_v21 = vpop.permute.xlu1 %1041 }
0x1021   :  { %v2240_v22 = vmul.f32 %v1895_v16, %v1042_v21 }
0x1023   :  { %1087 = vrot.lane.b32.xlu0 %v2240_v22, %s2001_s3 }
0x1095   :  { %v1088_v23 = vpop.permute.xlu0 %1087 }
0x1096   :  { %1738 = vmatmul.mubr.msk.f32.vlgmr.msra.gmra.mrb[12].mxu0 %vm53_vm1, %v1088_v23  ;;  %v2292_v23 = vld [vmem:[#allocation6] ss:$0 sm:$0xff] }
0x1097   :  { %1759 = vmatprep.mubr.msk.f32.mxu0 %vm1998_vm0, %v1999_v2 }
0x1169   :  { %v1157_v26 = vpop.f32.mrb[12].mxu0 }
0x116a   :  { %v1161_v27 = vadd.f32 %v1157_v26, %v196_v24  ;;  %v1739_v28 = vpop.f32.mrb[13].mxu0 }
0x116c   :  { %1898 = vtanh.f32 %v1161_v27  ;;  %v1581_v30 = vmul.f32 -1.442695, %v1161_v27 }
0x116e   :  { %1900 = vpow2.f32 %v1581_v30 }
0x1176   :  { %v1899_v29 = vpop.eup %1898 }
0x1177   :  { %1171 = vrot.lane.b32.xlu1 %v1899_v29, %s2000_s15 }
0x1178   :  { %v1901_v31 = vpop.eup %1900 }
0x1179   :  { %v1165_v32 = vadd.f32 1.0, %v1901_v31 }
0x117b   :  { %1902 = vrcp.f32 %v1165_v32 }
0x1185   :  { %v1903_v33 = vpop.eup %1902 }
0x1186   :  { %v1169_v37 = vmul.f32 %v1903_v33, %v1038_v63 }
0x11e9   :  { %v1172_v34 = vpop.permute.xlu1 %1171 }
0x11ea   :  { %v1174_v35 = vmul.f32 %v1903_v33, %v1172_v34 }
0x11ec   :  { %1176 = vrot.lane.b32.xlu0 %v1174_v35, %s2000_s15 }
0x125e   :  { %v1177_v38 = vpop.permute.xlu0 %1176 }
0x125f   :  { %v1179_v4 = vadd.f32 %v1177_v38, %v1169_v37 }
0x1261   :  { %1904 = vtanh.f32 %v1179_v4 }
0x126b   :  { %v1905_v39 = vpop.eup %1904 }
0x126c   :  { %1182 = vrot.lane.b32.xlu1 %v1905_v39, %s2000_s15 }
0x12de   :  { %v1183_v40 = vpop.permute.xlu1 %1182 }
0x12df   :  { %v2252_v41 = vmul.f32 %v1903_v33, %v1183_v40 }
0x12e1   :  { %1228 = vrot.lane.b32.xlu0 %v2252_v41, %s2001_s3 }
0x1353   :  { %v1229_v42 = vpop.permute.xlu0 %1228 }
0x1354   :  { %1749 = vmatmul.mubr.msk.f32.vlgmr.msra.gmra.mrb[8].mxu1 %vm53_vm1, %v1229_v42 }
0x1355   :  { %1770 = vmatprep.mubr.msk.f32.mxu1 %vm1998_vm0, %v1999_v2 }
0x1427   :  { %v1298_v45 = vpop.f32.mrb[8].mxu1 }
0x1428   :  { %v1302_v46 = vadd.f32 %v1298_v45, %v201_v43  ;;  %v1750_v47 = vpop.f32.mrb[9].mxu1 }
0x142a   :  { %1906 = vtanh.f32 %v1302_v46  ;;  %v1583_v50 = vmul.f32 -1.442695, %v1302_v46 }
0x142c   :  { %1908 = vpow2.f32 %v1583_v50 }
0x1434   :  { %v1907_v48 = vpop.eup %1906 }
0x1435   :  { %1312 = vrot.lane.b32.xlu1 %v1907_v48, %s2000_s15 }
0x1436   :  { %v1909_v51 = vpop.eup %1908 }
0x1437   :  { %v1306_v2 = vadd.f32 1.0, %v1909_v51 }
0x1439   :  { %336 = vrot.lane.b32.xlu1 %v1566_v49, %s2001_s3  ;;  %1910 = vrcp.f32 %v1306_v2 }
0x1443   :  { %v1911_v52 = vpop.eup %1910 }
0x1444   :  { %v1310_v58 = vmul.f32 %v1911_v52, %v1179_v4 }
0x14a7   :  { %v1313_v15 = vpop.permute.xlu1 %1312 }
0x14a8   :  { %v1315_v3 = vmul.f32 %v1911_v52, %v1313_v15 }
0x14aa   :  { %1317 = vrot.lane.b32.xlu0 %v1315_v3, %s2000_s15 }
0x14ab   :  { %v337_v53 = vpop.permute.xlu1 %336 }
0x14ac   :  { %v339_v54 = vmul.f32 %v337_v53, %v2129_v36  ;;  %v622_v55 = vmul.f32 %v2193_v25, %v337_v53  ;;  %v904_v56 = vmul.f32 %v2224_v0, %v337_v53  ;;  %v1186_v57 = vmul.f32 %v2252_v41, %v337_v53 }
0x14ad   :  { %v481_v7 = vmul.f32 %v2170_v60, %v337_v53  ;;  %v763_v8 = vmul.f32 %v2208_v44, %v337_v53  ;;  %v1045_v10 = vmul.f32 %v2240_v22, %v337_v53 }
0x14ae   :  { %341 = vrot.lane.b32.xlu1 %v339_v54, %s2001_s3 }
0x14b2   :  { %624 = vrot.lane.b32.xlu1 %v622_v55, %s2001_s3 }
0x14b6   :  { %906 = vrot.lane.b32.xlu1 %v904_v56, %s2001_s3 }
0x14ba   :  { %1188 = vrot.lane.b32.xlu1 %v1186_v57, %s2001_s3 }
0x151c   :  { %v1318_v59 = vpop.permute.xlu0 %1317 }
0x151d   :  { %v2275_v61 = vadd.f32 %v1318_v59, %v1310_v58 }
0x151f   :  { %1912 = vtanh.f32 %v2275_v61 }
0x1520   :  { %v342_v62 = vpop.permute.xlu1 %341 }
0x1521   :  { %v344_v5 = vsel %vm53_vm1, %v342_v62, 0.0 }
0x1522   :  { %345 = vadd.xlane.f32.xlu1 %v344_v5 }
0x1524   :  { %v625_v14 = vpop.permute.xlu1 %624 }
0x1525   :  { %v627_v38 = vsel %vm53_vm1, %v625_v14, 0.0 }
0x1528   :  { %v907_v18 = vpop.permute.xlu1 %906 }
0x1529   :  { %v1913_v6 = vpop.eup %1912  ;;  %v909_v4 = vsel %vm53_vm1, %v907_v18, 0.0 }
0x152a   :  { %1323 = vrot.lane.b32.xlu0 %v1913_v6, %s2000_s15 }
0x152c   :  { %v1189_v21 = vpop.permute.xlu1 %1188 }
0x152d   :  { %v1191_v39 = vsel %vm53_vm1, %v1189_v21, 0.0 }
0x152e   :  { %483 = vrot.lane.b32.xlu0 %v481_v7, %s2001_s3 }
0x1532   :  { %765 = vrot.lane.b32.xlu0 %v763_v8, %s2001_s3 }
0x1536   :  { %1047 = vrot.lane.b32.xlu0 %v1045_v10, %s2001_s3 }
0x159c   :  { %v1324_v9 = vpop.permute.xlu0 %1323 }
0x159d   :  { %v2286_v12 = vmul.f32 %v1911_v52, %v1324_v9 }
0x159f   :  { %v1327_v16 = vmul.f32 %v2286_v12, %v337_v53 }
0x15a0   :  { %v484_v17 = vpop.permute.xlu0 %483 }
0x15a1   :  { %1329 = vrot.lane.b32.xlu0 %v1327_v16, %s2001_s3  ;;  %v486_v35 = vsel %vm53_vm1, %v484_v17, 0.0 }
0x15a4   :  { %v766_v13 = vpop.permute.xlu0 %765 }
0x15a5   :  { %v768_v19 = vsel %vm53_vm1, %v766_v13, 0.0 }
0x15a6   :  { %769 = vadd.xlane.f32.xlu1 %v768_v19 }
0x15a8   :  { %v1048_v63 = vpop.permute.xlu0 %1047 }
0x15a9   :  { %v1050_v20 = vsel %vm53_vm1, %v1048_v63, 0.0 }
0x15aa   :  { %1051 = vadd.xlane.f32.xlu1 %v1050_v20 }
0x15af   :  { %v346_v24 = vpop.xlane.xlu1 %345 }
0x15b0   :  { %v347_v26 = vadd.f32 %v2292_v23, %v346_v24 }
0x15b2   :  { %v349_v27 = vsel %vm348_vm3, %v347_v26, -inf }
0x15b3   :  { %v350_v28 = vrot.slane %v349_v27, 4 }
0x15b5   :  { %v351_v29 = vmax.f32 %v349_v27, %v350_v28 }
0x15b7   :  { %v352_v30 = vrot.slane %v351_v29, 2 }
0x15b9   :  { %v353_v31 = vmax.f32 %v351_v29, %v352_v30 }
0x15bb   :  { %v354_v32 = vrot.slane %v353_v31, 1 }
0x15bd   :  { %v355_v33 = vmax.f32 %v353_v31, %v354_v32 }
0x15bf   :  { %v356_v34 = vsub.f32 %v347_v26, %v355_v33 }
0x15c0   :  { %487 = vadd.xlane.f32.xlu0 %v486_v35 }
0x15c1   :  { %v357_v37 = vmul.f32 1.442695, %v356_v34 }
0x15c3   :  { %1914 = vpow2.f32 %v357_v37 }
0x15c4   :  { %628 = vadd.xlane.f32.xlu0 %v627_v38 }
0x15c8   :  { %910 = vadd.xlane.f32.xlu0 %v909_v4 }
0x15cc   :  { %1192 = vadd.xlane.f32.xlu0 %v1191_v39 }
0x15cd   :  { %v1915_v40 = vpop.eup %1914 }
0x15ce   :  { %v359_v42 = vsel %vm348_vm3, %v1915_v40, 0.0 }
0x15cf   :  { %v360_v43 = vrot.slane %v359_v42, 4 }
0x15d1   :  { %v361_v45 = vadd.f32 %v360_v43, %v359_v42 }
0x15d3   :  { %v362_v46 = vrot.slane %v361_v45, 2 }
0x15d5   :  { %v363_v47 = vadd.f32 %v362_v46, %v361_v45 }
0x15d7   :  { %v364_v48 = vrot.slane %v363_v47, 1 }
0x15d9   :  { %v365_v49 = vadd.f32 %v364_v48, %v363_v47 }
0x15db   :  { %1916 = vrcp.f32 %v365_v49 }
0x15e5   :  { %v1917_v50 = vpop.eup %1916 }
0x15e6   :  { %v367_v51 = vmul.f32 %v1917_v50, %v1915_v40 }
0x15e8   :  { %370 = vperm.xlu0 %1848, %v367_v51  }
0x1613   :  { %v1330_v2 = vpop.permute.xlu0 %1329 }
0x1614   :  { %v1332_v52 = vsel %vm53_vm1, %v1330_v2, 0.0 }
0x1615   :  { %1333 = vadd.xlane.f32.xlu1 %v1332_v52 }
0x1633   :  { %v770_v15 = vpop.xlane.xlu1 %769 }
0x1634   :  { %v771_v3 = vadd.f32 %v2292_v23, %v770_v15 }
0x1636   :  { %v772_v53 = vsel %vm348_vm3, %v771_v3, -inf }
0x1637   :  { %v773_v54 = vrot.slane %v772_v53, 4  ;;  %v1052_v55 = vpop.xlane.xlu1 %1051 }
0x1638   :  { %v1053_v56 = vadd.f32 %v2292_v23, %v1052_v55 }
0x1639   :  { %v774_v57 = vmax.f32 %v772_v53, %v773_v54 }
0x163a   :  { %v1054_v58 = vsel %vm348_vm3, %v1053_v56, -inf }
0x163b   :  { %v775_v59 = vrot.slane %v774_v57, 2  ;;  %v1055_v62 = vrot.slane %v1054_v58, 4 }
0x163d   :  { %v776_v5 = vmax.f32 %v774_v57, %v775_v59  ;;  %v1056_v6 = vmax.f32 %v1054_v58, %v1055_v62 }
0x163f   :  { %v777_v7 = vrot.slane %v776_v5, 1  ;;  %v1057_v8 = vrot.slane %v1056_v6, 2 }
0x1641   :  { %v778_v10 = vmax.f32 %v776_v5, %v777_v7  ;;  %v1058_v11 = vmax.f32 %v1056_v6, %v1057_v8 }
0x1643   :  { %v779_v14 = vsub.f32 %v771_v3, %v778_v10  ;;  %v1059_v16 = vrot.slane %v1058_v11, 1 }
0x1645   :  { %v780_v63 = vmul.f32 1.442695, %v779_v14  ;;  %v1060_v20 = vmax.f32 %v1058_v11, %v1059_v16 }
0x1647   :  { %1918 = vpow2.f32 %v780_v63  ;;  %v1061_v30 = vsub.f32 %v1053_v56, %v1060_v20 }
0x1649   :  { %v1062_v39 = vmul.f32 1.442695, %v1061_v30 }
0x164b   :  { %1920 = vpow2.f32 %v1062_v39 }
0x164d   :  { %v488_v9 = vpop.xlane.xlu0 %487 }
0x164e   :  { %v489_v17 = vadd.f32 %v2292_v23, %v488_v9 }
0x1650   :  { %v490_v13 = vsel %vm348_vm3, %v489_v17, -inf }
0x1651   :  { %v491_v18 = vrot.slane %v490_v13, 4  ;;  %v629_v19 = vpop.xlane.xlu0 %628  ;;  %v2314_v3 = vpop.eup %1918 }
0x1652   :  { %v630_v21 = vadd.f32 %v2292_v23, %v629_v19  ;;  %v782_v56 = vsel %vm348_vm3, %v2314_v3, 0.0 }
0x1653   :  { %v492_v24 = vmax.f32 %v490_v13, %v491_v18  ;;  %v783_v6 = vrot.slane %v782_v56, 4 }
0x1654   :  { %v631_v26 = vsel %vm348_vm3, %v630_v21, -inf }
0x1655   :  { %v493_v27 = vrot.slane %v492_v24, 2  ;;  %v632_v28 = vrot.slane %v631_v26, 4  ;;  %v911_v29 = vpop.xlane.xlu0 %910  ;;  %v2318_v10 = vpop.eup %1920  ;;  %v784_v9 = vadd.f32 %v783_v6, %v782_v56 }
0x1656   :  { %v912_v31 = vadd.f32 %v2292_v23, %v911_v29 }
0x1657   :  { %v494_v32 = vmax.f32 %v492_v24, %v493_v27  ;;  %v633_v33 = vmax.f32 %v631_v26, %v632_v28  ;;  %v785_v19 = vrot.slane %v784_v9, 2 }
0x1658   :  { %v913_v34 = vsel %vm348_vm3, %v912_v31, -inf }
0x1659   :  { %v495_v35 = vrot.slane %v494_v32, 1  ;;  %v634_v37 = vrot.slane %v633_v33, 2  ;;  %v914_v38 = vrot.slane %v913_v34, 4  ;;  %v1193_v4 = vpop.xlane.xlu0 %1192  ;;  %v786_v28 = vadd.f32 %v785_v19, %v784_v9 }
0x165a   :  { %v1194_v40 = vadd.f32 %v2292_v23, %v1193_v4 }
0x165b   :  { %v496_v42 = vmax.f32 %v494_v32, %v495_v35  ;;  %v635_v43 = vmax.f32 %v633_v33, %v634_v37  ;;  %v915_v45 = vmax.f32 %v913_v34, %v914_v38  ;;  %v787_v38 = vrot.slane %v786_v28, 1 }
0x165c   :  { %v1195_v46 = vsel %vm348_vm3, %v1194_v40, -inf }
0x165d   :  { %v497_v47 = vsub.f32 %v489_v17, %v496_v42  ;;  %v636_v48 = vrot.slane %v635_v43, 1  ;;  %v916_v49 = vrot.slane %v915_v45, 2  ;;  %v1196_v50 = vrot.slane %v1195_v46, 4 }
0x165e   :  { %v1064_v17 = vsel %vm348_vm3, %v2318_v10, 0.0 }
0x165f   :  { %v498_v51 = vmul.f32 1.442695, %v497_v47  ;;  %v637_v2 = vmax.f32 %v635_v43, %v636_v48  ;;  %v917_v52 = vmax.f32 %v915_v45, %v916_v49  ;;  %v1197_v15 = vmax.f32 %v1195_v46, %v1196_v50 }
0x1660   :  { %v1065_v20 = vrot.slane %v1064_v17, 4  ;;  %v788_v49 = vadd.f32 %v787_v38, %v786_v28 }
0x1661   :  { %1922 = vpow2.f32 %v498_v51  ;;  %v638_v53 = vsub.f32 %v630_v21, %v637_v2  ;;  %v918_v54 = vrot.slane %v917_v52, 1  ;;  %v1198_v55 = vrot.slane %v1197_v15, 2 }
0x1662   :  { %v1066_v30 = vadd.f32 %v1065_v20, %v1064_v17 }
0x1663   :  { %v639_v57 = vmul.f32 1.442695, %v638_v53  ;;  %v919_v58 = vmax.f32 %v917_v52, %v918_v54  ;;  %v1199_v59 = vmax.f32 %v1197_v15, %v1198_v55 }
0x1664   :  { %v1067_v39 = vrot.slane %v1066_v30, 2 }
0x1665   :  { %1924 = vpow2.f32 %v639_v57  ;;  %v920_v62 = vsub.f32 %v912_v31, %v919_v58  ;;  %v1200_v5 = vrot.slane %v1199_v59, 1 }
0x1666   :  { %v1068_v52 = vadd.f32 %v1067_v39, %v1066_v30 }
0x1667   :  { %v921_v7 = vmul.f32 1.442695, %v920_v62  ;;  %v1201_v8 = vmax.f32 %v1199_v59, %v1200_v5  ;;  %v371_v39 = vpop.permute.xlu0 %370 }
0x1668   :  { %v1069_v55 = vrot.slane %v1068_v52, 1 }
0x1669   :  { %1926 = vpow2.f32 %v921_v7  ;;  %v1202_v11 = vsub.f32 %v1194_v40, %v1201_v8 }
0x166a   :  { %v1070_v58 = vadd.f32 %v1069_v55, %v1068_v52  ;;  %v1383_v55 = vld [vmem:[%s2402_s6 + $0x18] sm:$0xff] }
0x166b   :  { %v1923_v14 = vpop.eup %1922  ;;  %v1203_v16 = vmul.f32 1.442695, %v1202_v11 }
0x166c   :  { %v500_v13 = vsel %vm348_vm3, %v1923_v14, 0.0 }
0x166d   :  { %v501_v18 = vrot.slane %v500_v13, 4  ;;  %1928 = vpow2.f32 %v1203_v16 }
0x166f   :  { %v1925_v63 = vpop.eup %1924  ;;  %v502_v21 = vadd.f32 %v501_v18, %v500_v13 }
0x1670   :  { %v641_v24 = vsel %vm348_vm3, %v1925_v63, 0.0 }
0x1671   :  { %v503_v26 = vrot.slane %v502_v21, 2  ;;  %v642_v27 = vrot.slane %v641_v24, 4 }
0x1673   :  { %v1927_v29 = vpop.eup %1926  ;;  %v643_v31 = vadd.f32 %v642_v27, %v641_v24  ;;  %v504_v32 = vadd.f32 %v503_v26, %v502_v21 }
0x1674   :  { %v923_v33 = vsel %vm348_vm3, %v1927_v29, 0.0 }
0x1675   :  { %v644_v34 = vrot.slane %v643_v31, 2  ;;  %v924_v35 = vrot.slane %v923_v33, 4  ;;  %v505_v37 = vrot.slane %v504_v32, 1 }
0x1677   :  { %v1929_v4 = vpop.eup %1928  ;;  %v925_v40 = vadd.f32 %v924_v35, %v923_v33  ;;  %v506_v42 = vadd.f32 %v505_v37, %v504_v32  ;;  %v645_v43 = vadd.f32 %v644_v34, %v643_v31 }
0x1678   :  { %v1205_v45 = vsel %vm348_vm3, %v1929_v4, 0.0 }
0x1679   :  { %v926_v46 = vrot.slane %v925_v40, 2  ;;  %v1206_v47 = vrot.slane %v1205_v45, 4  ;;  %1930 = vrcp.f32 %v506_v42  ;;  %v646_v48 = vrot.slane %v645_v43, 1 }
0x167b   :  { %v1207_v50 = vadd.f32 %v1206_v47, %v1205_v45  ;;  %v647_v51 = vadd.f32 %v646_v48, %v645_v43  ;;  %v927_v2 = vadd.f32 %v926_v46, %v925_v40  ;;  %v373_v40 = vmul.f32 %v371_v39, %v2129_v36  ;;  %v1384_v47 = vld [vmem:[%s2403_s7] sm:$0xff]  ;;  %v1385_v48 = vld [vmem:[%s2403_s7 + $0x8] sm:$0xff] }
0x167d   :  { %v1208_v15 = vrot.slane %v1207_v50, 2  ;;  %1932 = vrcp.f32 %v647_v51  ;;  %v928_v53 = vrot.slane %v927_v2, 1 }
0x167e   :  { %1934 = vrcp.f32 %v788_v49  ;;  %v1826_v49 = vpack.c.bf16 %v1385_v48, %v1384_v47 }
0x167f   :  { %v929_v54 = vadd.f32 %v928_v53, %v927_v2  ;;  %v1209_v56 = vadd.f32 %v1208_v15, %v1207_v50  ;;  %v1387_v50 = vld [vmem:[%s2403_s7 + $0x18] sm:$0xff]  ;;  %v1381_v15 = vld [vmem:[%s2402_s6 + $0x8] sm:$0xff]  ;;  %v1382_v53 = vld [vmem:[%s2402_s6 + $0x10] sm:$0xff] }
0x1680   :  { %1827 = vmatpush3.bf16.msra.mxu0 %v1826_v49 }
0x1681   :  { %1936 = vrcp.f32 %v929_v54  ;;  %v1210_v59 = vrot.slane %v1209_v56, 1  ;;  %1828 = vmatprep.subr.bf16.mxu0 %v1997_v1 }
0x1682   :  { %1938 = vrcp.f32 %v1070_v58 }
0x1683   :  { %v1931_v57 = vpop.eup %1930  ;;  %v1211_v6 = vadd.f32 %v1210_v59, %v1209_v56 }
0x1684   :  { %v508_v62 = vmul.f32 %v1931_v57, %v1923_v14  ;;  %v1835_v57 = vpack.c.bf16 %v1383_v55, %v1382_v53 }
0x1685   :  { %1940 = vrcp.f32 %v1211_v6 }
0x1686   :  { %511 = vperm.xlu1 %1849, %v508_v62  }
0x1687   :  { %v1933_v5 = vpop.eup %1932 }
0x1688   :  { %v649_v7 = vmul.f32 %v1933_v5, %v1925_v63  ;;  %v1935_v8 = vpop.eup %1934 }
0x1689   :  { %v790_v11 = vmul.f32 %v1935_v8, %v2314_v3 }
0x168a   :  { %652 = vperm.xlu1 %1849, %v649_v7  }
0x168b   :  { %v1937_v9 = vpop.eup %1936 }
0x168c   :  { %v931_v16 = vmul.f32 %v1937_v9, %v1927_v29  ;;  %v1939_v17 = vpop.eup %1938 }
0x168d   :  { %v1072_v13 = vmul.f32 %v1939_v17, %v2318_v10 }
0x168e   :  { %793 = vperm.xlu1 %1849, %v790_v11  }
0x168f   :  { %v1941_v18 = vpop.eup %1940 }
0x1690   :  { %v1213_v14 = vmul.f32 %v1941_v18, %v1929_v4 }
0x1692   :  { %934 = vperm.xlu1 %1849, %v931_v16  }
0x1696   :  { %1075 = vperm.xlu1 %1849, %v1072_v13  }
0x169a   :  { %1216 = vperm.xlu1 %1849, %v1213_v14  }
0x16a2   :  { %v1334_v19 = vpop.xlane.xlu1 %1333 }
0x16a3   :  { %v1335_v20 = vadd.f32 %v2292_v23, %v1334_v19 }
0x16a5   :  { %v1336_v63 = vsel %vm348_vm3, %v1335_v20, -inf }
0x16a6   :  { %v1337_v21 = vrot.slane %v1336_v63, 4 }
0x16a8   :  { %v1338_v24 = vmax.f32 %v1336_v63, %v1337_v21 }
0x16aa   :  { %v1339_v26 = vrot.slane %v1338_v24, 2 }
0x16ac   :  { %v1340_v3 = vmax.f32 %v1338_v24, %v1339_v26 }
0x16ae   :  { %v1341_v27 = vrot.slane %v1340_v3, 1 }
0x16b0   :  { %v1342_v28 = vmax.f32 %v1340_v3, %v1341_v27  ;;  %v1586_v27 = vld [vmem:[%s2404_s8] ss:$0 sm:$0xff] }
0x16b2   :  { %v1343_v29 = vsub.f32 %v1335_v20, %v1342_v28 }
0x16b4   :  { %v1344_v30 = vmul.f32 1.442695, %v1343_v29 }
0x16b6   :  { %1942 = vpow2.f32 %v1344_v30 }
0x16c0   :  { %v1943_v31 = vpop.eup %1942 }
0x16c1   :  { %v1346_v10 = vsel %vm348_vm3, %v1943_v31, 0.0 }
0x16c2   :  { %v1347_v32 = vrot.slane %v1346_v10, 4 }
0x16c4   :  { %v1348_v33 = vadd.f32 %v1347_v32, %v1346_v10 }
0x16c6   :  { %v1349_v34 = vrot.slane %v1348_v33, 2 }
0x16c8   :  { %v1350_v35 = vadd.f32 %v1349_v34, %v1348_v33 }
0x16ca   :  { %v1351_v37 = vrot.slane %v1350_v35, 1 }
0x16cc   :  { %v1352_v23 = vadd.f32 %v1351_v37, %v1350_v35 }
0x16ce   :  { %1944 = vrcp.f32 %v1352_v23 }
0x16d8   :  { %v1945_v38 = vpop.eup %1944 }
0x16d9   :  { %v1354_v4 = vmul.f32 %v1945_v38, %v1943_v31 }
0x16db   :  { %1357 = vperm.xlu1 %1849, %v1354_v4  }
0x16df   :  { %375 = vrot.lane.b32.xlu1 %v373_v40, %s2001_s3 }
0x1705   :  { %v512_v42 = vpop.permute.xlu1 %511 }
0x1706   :  { %v514_v43 = vmul.f32 %v512_v42, %v2170_v60 }
0x1708   :  { %516 = vrot.lane.b32.xlu0 %v514_v43, %s2001_s3 }
0x1709   :  { %v653_v45 = vpop.permute.xlu1 %652 }
0x170a   :  { %v655_v46 = vmul.f32 %v653_v45, %v2193_v25  ;;  %v1386_v25 = vld [vmem:[%s2403_s7 + $0x10] sm:$0xff] }
0x170b   :  { %v1829_v51 = vpack.c.bf16 %v1387_v50, %v1386_v25 }
0x170c   :  { %657 = vrot.lane.b32.xlu1 %v655_v46, %s2001_s3 }
0x170d   :  { %v794_v36 = vpop.permute.xlu1 %793  ;;  %1830 = vmatpush3.bf16.msra.mxu0 %v1829_v51 }
0x170e   :  { %v796_v60 = vmul.f32 %v794_v36, %v2208_v44  ;;  %v1380_v44 = vld [vmem:[%s2402_s6] sm:$0xff] }
0x170f   :  { %v1832_v54 = vpack.c.bf16 %v1381_v15, %v1380_v44 }
0x1710   :  { %798 = vrot.lane.b32.xlu0 %v796_v60, %s2001_s3 }
0x1711   :  { %v935_v2 = vpop.permute.xlu1 %934  ;;  %1833 = vmatpush3.bf16.msra.mxu1 %v1832_v54 }
0x1712   :  { %v937_v52 = vmul.f32 %v935_v2, %v2224_v0  ;;  %1834 = vmatprep.subr.bf16.mxu1 %v1997_v1 }
0x1714   :  { %939 = vrot.lane.b32.xlu1 %v937_v52, %s2001_s3 }
0x1715   :  { %v1076_v0 = vpop.permute.xlu1 %1075  ;;  %1836 = vmatpush3.bf16.msra.mxu1 %v1835_v57 }
0x1716   :  { %v1078_v56 = vmul.f32 %v1076_v0, %v2240_v22 }
0x1718   :  { %1080 = vrot.lane.b32.xlu0 %v1078_v56, %s2001_s3 }
0x1719   :  { %v1217_v58 = vpop.permute.xlu1 %1216 }
0x171a   :  { %v1219_v59 = vmul.f32 %v1217_v58, %v2252_v41  ;;  %v227_v41 = vld [vmem:[#allocation5] sm:$0xff] }
0x171c   :  { %1221 = vrot.lane.b32.xlu1 %v1219_v59, %s2001_s3 }
0x1720   :  { %1372 = vrot.lane.b32.xlu1 %v2275_v61, %s2003_s19 }
0x175a   :  { %v1358_v62 = vpop.permute.xlu1 %1357 }
0x175b   :  { %v1360_v5 = vmul.f32 %v1358_v62, %v2286_v12 }
0x175d   :  { %1362 = vrot.lane.b32.xlu0 %v1360_v5, %s2001_s3 }
0x175e   :  { %v376_v1 = vpop.permute.xlu1 %375 }
0x175f   :  { %v378_v61 = vadd.f32 %v376_v1, %v227_v41 }
0x1761   :  { %1367 = vrot.lane.b32.xlu0 %v2286_v12, %s2001_s3 }
0x177a   :  { %v517_v11 = vpop.permute.xlu0 %516 }
0x177b   :  { %v519_v9 = vadd.f32 %v517_v11, %v378_v61 }
0x177e   :  { %v658_v22 = vpop.permute.xlu1 %657 }
0x177f   :  { %v660_v17 = vadd.f32 %v658_v22, %v519_v9 }
0x1782   :  { %v799_v16 = vpop.permute.xlu0 %798 }
0x1783   :  { %v801_v13 = vadd.f32 %v799_v16, %v660_v17 }
0x1786   :  { %v940_v6 = vpop.permute.xlu1 %939 }
0x1787   :  { %v942_v14 = vadd.f32 %v940_v6, %v801_v13 }
0x178a   :  { %v1081_v18 = vpop.permute.xlu0 %1080 }
0x178b   :  { %v1083_v19 = vadd.f32 %v1081_v18, %v942_v14 }
0x178e   :  { %v1222_v7 = vpop.permute.xlu1 %1221 }
0x178f   :  { %v1224_v12 = vadd.f32 %v1222_v7, %v1083_v19 }
0x1792   :  { %v1373_v8 = vpop.permute.xlu1 %1372 }
0x1793   :  { %1375 = vst.msk [vmem:[#allocation4] sm:$0xff] %vm53_vm1, %v1373_v8  ;;  %1760 = vmatmul.mubr.msk.f32.vlgmr.msra.gmra.mrb[14].mxu0 %vm53_vm1, %v1373_v8 }
0x17cf   :  { %v1363_v20 = vpop.permute.xlu0 %1362 }
0x17d0   :  { %v1365_v63 = vadd.f32 %v1363_v20, %v1224_v12 }
0x17d2   :  { %1376 = vst.msk [vmem:[#allocation5] sm:$0xff] %vm53_vm1, %v1365_v63  ;;  %1771 = vmatmul.mubr.msk.f32.vlgmr.msra.gmra.mrb[10].mxu1 %vm53_vm1, %v1365_v63 }
0x17d3   :  { %v1368_v21 = vpop.permute.xlu0 %1367 }
0x17d4   :  { %1370 = vst.msk [vmem:[#allocation3] sm:$0xff] %vm53_vm1, %v1368_v21 }
0x1866   :  { %v1456_v24 = vpop.f32.mrb[14].mxu0 }
0x1867   :  { %v1761_v26 = vpop.f32.mrb[15].mxu0 }
0x18a5   :  { %v1529_v3 = vpop.f32.mrb[10].mxu1 }
0x18a6   :  { %v1530_v28 = vadd.f32 %v1529_v3, %v1456_v24  ;;  %v1772_v29 = vpop.f32.mrb[11].mxu1 }
0x18a8   :  { %v1540_v30 = vadd.f32 %v1586_v27, %v1530_v28 }
0x18aa   :  { %1541 = vst [vmem:[#allocation10] sm:$0xff] %v1540_v30 }
0x18ab   :  { %1979 = shalt.err (!%p1976_p12)
}
0x18ac   :  { %s1980_s1 = scalar_lea.hbm %s2405_s9, 128 }
0x18ad   :  { %p1981_p13 = scmp.ne.s32.totalorder %s2405_s9, %s1980_s1  ;;  %p1984_p0 = scmp.lt.u32.totalorder %s1980_s1, %s2405_s9 }
0x18af   :  { %p1986_p1 = pnand %p1984_p0, %p1981_p13 }
0x18b1   :  { %1989 = shalt.err (!%p1986_p1)
}
0x18b2   :  { %1551 = dma.vmem_to_hbm [thread:$0]  %s1549_s20, 128, %s2405_s9, [#allocation9]  }
0x18b3   :  { %1992 = dma.done.wait [#allocation9], 128  }
0x18b4   :  { %1993 = vsyncadd [#allocation9], 4294967168 }
0x18b5   :  { %1555 = vsyncpa [#allocation8], 1 }
0x18b6   :  { %1556 = vsyncpa [#allocation9], 1 }

</bundles_post_ra>
